<compile_context>
chip_gen: v7x
topology: tpu7x:2x2x1
jax: 0.10.0
libtpu: 0.0.40
codegen_flags: <defaults>
</compile_context>

<pallas_src>
import functools
import math

import jax
import jax.numpy as jnp
from jax.experimental import pallas as pl
from jax.experimental.pallas import tpu as pltpu


def _round_up(x, m):
    return (x + m - 1) // m * m


def _cdiv(a, b):
    return (a + b - 1) // b


def _tree_sum(terms):
    """Pairwise (balanced) reduction — short dependence chain for the 4 VALU slots."""
    terms = list(terms)
    while len(terms) > 1:
        nxt = [terms[i] + terms[i + 1] for i in range(0, len(terms) - 1, 2)]
        if len(terms) % 2:
            nxt.append(terms[-1])
        terms = nxt
    return terms[0]


# --------------------------------- kernel ---------------------------------

def ple_kernel(x_sh_ref, x_t1_ref, x_t2_ref,
               ln_g_ref, ln_b_ref,
               w_sh_ref, b_sh_ref,
               w_t1_ref, b_t1_ref,
               w_t2_ref, b_t2_ref,
               o_sh_ref, o_t1_ref, o_t2_ref,
               *, experts_num, combine_dtype):
    H = x_sh_ref.shape[1]
    E = experts_num
    EH = E * H
    cdt = w_sh_ref.dtype               # MXU operand dtype (bf16 on the fast path)
    cmb = jnp.dtype(combine_dtype)     # VPU dtype for the combine stage

    def layernorm(x, g, b):
        mu = jnp.mean(x, axis=-1, keepdims=True)
        xc = x - mu
        var = jnp.mean(xc * xc, axis=-1, keepdims=True)
        inv = jax.lax.rsqrt(var + 1e-5)
        return xc * inv * g + b

    x_sh = layernorm(x_sh_ref[...], ln_g_ref[0:1, :], ln_b_ref[0:1, :])
    x_t1 = layernorm(x_t1_ref[...], ln_g_ref[1:2, :], ln_b_ref[1:2, :])
    x_t2 = layernorm(x_t2_ref[...], ln_g_ref[2:3, :], ln_b_ref[2:3, :])

    def experts_and_gate(x_ln, w_ref, b_ref, gate_dim):
        # One fused lane-dense MXU pass per stream: [T, H] @ [H, E*H + pad128(gate)].
        y = jnp.dot(x_ln.astype(cdt), w_ref[...],
                    preferred_element_type=jnp.float32)
        # Split bias add: no VPU work on the dead gate-padding lanes.
        exp = jnp.maximum(y[:, :EH] + b_ref[0:1, :EH], 0.0)                  # relu
        logits = y[:, EH:EH + gate_dim] + b_ref[0:1, EH:EH + gate_dim]
        m = jnp.max(logits, axis=-1, keepdims=True)
        e = jnp.exp(logits - m)
        gate = e * pl.reciprocal(jnp.sum(e, axis=-1, keepdims=True), approx=True)
        return exp, gate

    exp_sh, g_sh = experts_and_gate(x_sh, w_sh_ref, b_sh_ref, 3 * E)
    exp_t1, g_t1 = experts_and_gate(x_t1, w_t1_ref, b_t1_ref, 2 * E)
    exp_t2, g_t2 = experts_and_gate(x_t2, w_t2_ref, b_t2_ref, 2 * E)

    def combine(g, exp_list):
        # out[t, h] = sum_j g[t, j] * exp_cat[t, j*H + h].
        # Tree-structured: per-stream partial sums, then a pairwise sum across
        # streams; each gate-column broadcast is built exactly once per term.
        if cmb != jnp.dtype(jnp.float32):
            g = g.astype(cmb)
            exp_list = [ex.astype(cmb) for ex in exp_list]
        partials, col = [], 0
        for ex in exp_list:
            terms = [g[:, col + e:col + e + 1] * ex[:, e * H:(e + 1) * H]
                     for e in range(E)]
            col += E
            partials.append(_tree_sum(terms))
        return _tree_sum(partials)

    # concat orders match the PyTorch module:
    #   shared: [task1, shared, task2], task1: [task1, shared], task2: [task2, shared]
    o_sh_ref[...] = combine(g_sh, [exp_t1, exp_sh, exp_t2]).astype(o_sh_ref.dtype)
    o_t1_ref[...] = combine(g_t1, [exp_t1, exp_sh]).astype(o_t1_ref.dtype)
    o_t2_ref[...] = combine(g_t2, [exp_t2, exp_sh]).astype(o_t2_ref.dtype)


# --------------------------------- wrapper ---------------------------------

def ple_layer_pallas(x_sh, x_t1, x_t2, params, *, experts_num,
                     token_tile=512, combine_dtype=jnp.float32,
                     out_dtype=None, token_buffers=None,
                     vmem_limit_bytes=None):
    """x_*: [B, S, H] float32.  Returns three [B, S, H] outputs."""
    B, S, H = x_sh.shape
    N = B * S
    E = experts_num
    WF = params["wf_sh"].shape[1]              # E*H + pad128(gate_dim)
    out_dtype = x_sh.dtype if out_dtype is None else out_dtype

    # Token tile: multiple of 8 (f32 sublanes).  Large tiles amortise the fixed
    # per-grid-step cost and issue bigger DMAs.  Additionally cap so there are
    # at least 2 grid steps, so the "parallel" token axis can shard across both
    # TensorCores on dual-TC chips (harmless on single-TC chips).
    tt = min(token_tile, _round_up(N, 8))
    tt = max(8, (tt // 8) * 8)
    if N > 8:
        tt = min(tt, max(8, _round_up(_cdiv(N, 2), 8)))
    grid = (_cdiv(N, tt),)

    # No host padding: Pallas clamps the partial tail block's DMAs.  Tail rows
    # of the last tile hold unspecified data (per-row LN/softmax cannot
    # contaminate valid rows) and are never written back past N.
    xs = [x.reshape(N, H) for x in (x_sh, x_t1, x_t2)]

    if token_buffers is None:
        tok_spec = pl.BlockSpec((tt, H), lambda i: (i, 0))
    else:
        # e.g. token_buffers=3 on HBM-bound v5e if the profile shows exposed DMA.
        tok_spec = pl.BlockSpec((tt, H), lambda i: (i, 0),
                                pipeline_mode=pl.Buffered(token_buffers))
    out_spec = pl.BlockSpec((tt, H), lambda i: (i, 0))
    # Grid-invariant parameters: whole array resident in VMEM, single-buffered
    # (kept out of the double-buffered pipeline).
    vmem_res = pl.BlockSpec(memory_space=pltpu.MemorySpace.VMEM)

    in_specs = [tok_spec, tok_spec, tok_spec,
                vmem_res, vmem_res,          # LN gamma / beta   (3, H)
                vmem_res, vmem_res,          # shared fused W, b
                vmem_res, vmem_res,          # task1  fused W, b
                vmem_res, vmem_res]          # task2  fused W, b
    out_specs = [out_spec, out_spec, out_spec]
    out_shape = [jax.ShapeDtypeStruct((N, H), out_dtype)] * 3

    if vmem_limit_bytes is None:
        # Always set a generation-aware limit: v5e's default scoped VMEM is only
        # 16 MiB, and v7x has only 64 MiB physical VMEM — never over-ask.
        param_bytes = sum(int(v.size) * v.dtype.itemsize for v in params.values())
        act_bytes = 2 * 6 * tt * H * 4                  # 3 in + 3 out tiles, x2 buffers
        tmp_bytes = 3 * tt * WF * 4 + 16 * tt * H * 4   # fused outputs + LN/combine temps
        est = param_bytes + act_bytes + tmp_bytes
        try:
            vmem_cap = int(pltpu.get_tpu_info().vmem_capacity_bytes)
        except Exception:
            vmem_cap = 64 * 1024 * 1024                 # conservative (v7x-sized)
        ceiling = max(vmem_cap - 16 * 1024 * 1024, 16 * 1024 * 1024)
        vmem_limit_bytes = int(min(max(2 * est + (4 << 20), 32 << 20), ceiling))

    fn = pl.pallas_call(
        functools.partial(ple_kernel, experts_num=E, combine_dtype=combine_dtype),
        grid_spec=pltpu.PrefetchScalarGridSpec(
            num_scalar_prefetch=0,
            grid=grid,
            in_specs=in_specs,
            out_specs=out_specs,
        ),
        out_shape=out_shape,
        compiler_params=pltpu.CompilerParams(
            dimension_semantics=("parallel",),   # token axis shards across TCs
            vmem_limit_bytes=vmem_limit_bytes,
        ),
    )

    o_sh, o_t1, o_t2 = fn(
        xs[0], xs[1], xs[2],
        params["ln_g"], params["ln_b"],
        params["wf_sh"], params["bf_sh"],
        params["wf_t1"], params["bf_t1"],
        params["wf_t2"], params["bf_t2"],
    )
    return (o_sh.reshape(B, S, H),
            o_t1.reshape(B, S, H),
            o_t2.reshape(B, S, H))


# ---------------------------- parameter building ----------------------------

def make_params(key, hidden_size, experts_num, selector_num,
                compute_dtype=jnp.bfloat16):
    """Returns (kernel_params, raw_params).

    kernel_params: fused / laid-out tensors the Pallas kernel consumes
      (expert+gate weights packed to [H, E*H + pad128(gate_dim)], MXU operands
       in compute_dtype, biases in f32).
    raw_params: the PyTorch-module-native parameterisation for the reference.
    """
    H, E = hidden_size, experts_num
    assert selector_num == 2, "torch.cat shape consistency requires selector_num == 2"
    gpad = _round_up(3 * E, 128)
    ks = jax.random.split(key, 6)

    def xavier3d(k, shape):
        # torch xavier_uniform_ on [in, out_h, E]: fan_in = out_h*E, fan_out = in*E
        fan_in = shape[1] * shape[2]
        fan_out = shape[0] * shape[2]
        bound = math.sqrt(6.0 / (fan_in + fan_out))
        return jax.random.uniform(k, shape, jnp.float32, -bound, bound)

    def uni(k, shape, bound):
        return jax.random.uniform(k, shape, jnp.float32, -bound, bound)

    def expert_raw(k):
        kw, kb = jax.random.split(k)
        w3 = xavier3d(kw, (H, H, E))                  # [in, out_h, expert]
        b2 = uni(kb, (H, E), 1.0 / math.sqrt(H))      # [out_h, expert]
        return w3, b2

    def gate_raw(k, out_dim):
        kw, kb = jax.random.split(k)
        bound = 1.0 / math.sqrt(H)
        return uni(kw, (H, out_dim), bound), uni(kb, (out_dim,), bound)

    w3_sh, b2_sh = expert_raw(ks[0])
    w3_t1, b2_t1 = expert_raw(ks[1])
    w3_t2, b2_t2 = expert_raw(ks[2])
    wg_sh, bg_sh = gate_raw(ks[3], 3 * E)
    wg_t1, bg_t1 = gate_raw(ks[4], selector_num * E)
    wg_t2, bg_t2 = gate_raw(ks[5], selector_num * E)

    ln_g = jnp.ones((3, H), jnp.float32)
    ln_b = jnp.zeros((3, H), jnp.float32)

    def fuse(w3, b2, wg, bg):
        # expert part -> expert-major / hidden-minor [H, E*H]
        w_exp = jnp.transpose(w3, (0, 2, 1)).reshape(H, E * H)
        b_exp = jnp.transpose(b2, (1, 0)).reshape(1, E * H)
        gdim = wg.shape[1]
        w_gate = jnp.pad(wg, ((0, 0), (0, gpad - gdim)))
        b_gate = jnp.pad(bg.reshape(1, gdim), ((0, 0), (0, gpad - gdim)))
        w_f = jnp.concatenate([w_exp, w_gate], axis=1).astype(compute_dtype)
        b_f = jnp.concatenate([b_exp, b_gate], axis=1).astype(jnp.float32)
        return w_f, b_f

    wf_sh, bf_sh = fuse(w3_sh, b2_sh, wg_sh, bg_sh)
    wf_t1, bf_t1 = fuse(w3_t1, b2_t1, wg_t1, bg_t1)
    wf_t2, bf_t2 = fuse(w3_t2, b2_t2, wg_t2, bg_t2)

    params = dict(ln_g=ln_g, ln_b=ln_b,
                  wf_sh=wf_sh, bf_sh=bf_sh,
                  wf_t1=wf_t1, bf_t1=bf_t1,
                  wf_t2=wf_t2, bf_t2=bf_t2)
    raw = dict(ln_g=ln_g, ln_b=ln_b,
               w3_sh=w3_sh, b2_sh=b2_sh, w3_t1=w3_t1, b2_t1=b2_t1,
               w3_t2=w3_t2, b2_t2=b2_t2,
               wg_sh=wg_sh, bg_sh=bg_sh, wg_t1=wg_t1, bg_t1=bg_t1,
               wg_t2=wg_t2, bg_t2=bg_t2)
    return params, raw


# ---------------------------- pure-JAX reference ----------------------------

def ple_layer_reference(x_sh, x_t1, x_t2, raw, *, mxu_dtype=None):
    """Module semantics in plain JAX.  mxu_dtype != None emulates the kernel's
    reduced-precision (bf16) MXU operands for an apples-to-apples check."""
    def ln(x, g, b):
        mu = x.mean(-1, keepdims=True)
        var = ((x - mu) ** 2).mean(-1, keepdims=True)
        return (x - mu) * jax.lax.rsqrt(var + 1e-5) * g + b

    def cast(v):
        return v if mxu_dtype is None else v.astype(mxu_dtype).astype(jnp.float32)

    xs = ln(x_sh, raw["ln_g"][0], raw["ln_b"][0])
    x1 = ln(x_t1, raw["ln_g"][1], raw["ln_b"][1])
    x2 = ln(x_t2, raw["ln_g"][2], raw["ln_b"][2])

    def exp3d(x, w3, b2):
        return jax.nn.relu(jnp.einsum('bsk,kxy->bsxy', cast(x), cast(w3)) + b2)

    e_sh = exp3d(xs, raw["w3_sh"], raw["b2_sh"])   # [B,S,H,E]
    e_t1 = exp3d(x1, raw["w3_t1"], raw["b2_t1"])
    e_t2 = exp3d(x2, raw["w3_t2"], raw["b2_t2"])

    def gate(x, w, b):
        return jax.nn.softmax(cast(x) @ cast(w) + b, axis=-1)

    g_sh = gate(xs, raw["wg_sh"], raw["bg_sh"])
    g_t1 = gate(x1, raw["wg_t1"], raw["bg_t1"])
    g_t2 = gate(x2, raw["wg_t2"], raw["bg_t2"])

    cat_sh = jnp.concatenate([e_t1, e_sh, e_t2], axis=-1)
    cat_t1 = jnp.concatenate([e_t1, e_sh], axis=-1)
    cat_t2 = jnp.concatenate([e_t2, e_sh], axis=-1)

    o_sh = jnp.einsum('bse,bshe->bsh', g_sh, cat_sh)
    o_t1 = jnp.einsum('bse,bshe->bsh', g_t1, cat_t1)
    o_t2 = jnp.einsum('bse,bshe->bsh', g_t2, cat_t2)
    return o_sh, o_t1, o_t2


if __name__ == "__main__":
    # small but lane-dense demo shapes (H multiple of 128)
    B, S, H = 2, 8, 128
    experts_num, selector_num = 4, 2
    compute_dtype = jnp.bfloat16

    key = jax.random.PRNGKey(0)
    kx1, kx2, kx3, kp = jax.random.split(key, 4)
    x_sh = jax.random.normal(kx1, (B, S, H), jnp.float32)
    x_t1 = jax.random.normal(kx2, (B, S, H), jnp.float32)
    x_t2 = jax.random.normal(kx3, (B, S, H), jnp.float32)

    params, raw = make_params(kp, H, experts_num, selector_num,
                              compute_dtype=compute_dtype)

    outs = ple_layer_pallas(x_sh, x_t1, x_t2, params, experts_num=experts_num)
    outs = jax.block_until_ready(outs)

    # (a) apples-to-apples: reference with the same bf16 rounding of MXU operands
    refs_emul = ple_layer_reference(x_sh, x_t1, x_t2, raw, mxu_dtype=compute_dtype)
    # (b) exact f32 module semantics; looser tolerance only reflects bf16 MXU inputs
    refs_f32 = ple_layer_reference(x_sh, x_t1, x_t2, raw, mxu_dtype=None)

    for o, rb, rf in zip(outs, refs_emul, refs_f32):
        assert o.shape == (B, S, H)
        err_b = float(jnp.max(jnp.abs(o - rb)))
        err_f = float(jnp.max(jnp.abs(o - rf)))
        assert jnp.allclose(o, rb, atol=5e-3, rtol=5e-3), ("bf16-emulated ref", err_b)
        assert jnp.allclose(o, rf, atol=3e-2, rtol=3e-2), ("exact f32 ref", err_f)

    # TODO(synk): use_ff=True feed-forward branch and train-mode dropout are not
    # implemented (module is exercised with use_ff=False, eval-mode dropout).
    print("KERNEL_OK")
</pallas_src>

<mosaic_0001>
module attributes {stable_mosaic.version = 11 : i64} {
  func.func @ple_kernel(%arg0: i32, %arg1: memref<8x128xf32, #tpu.memory_space<vmem>>, %arg2: memref<8x128xf32, #tpu.memory_space<vmem>>, %arg3: memref<8x128xf32, #tpu.memory_space<vmem>>, %arg4: memref<3x128xf32, #tpu.memory_space<vmem>>, %arg5: memref<3x128xf32, #tpu.memory_space<vmem>>, %arg6: memref<128x640xbf16, #tpu.memory_space<vmem>>, %arg7: memref<1x640xf32, #tpu.memory_space<vmem>>, %arg8: memref<128x640xbf16, #tpu.memory_space<vmem>>, %arg9: memref<1x640xf32, #tpu.memory_space<vmem>>, %arg10: memref<128x640xbf16, #tpu.memory_space<vmem>>, %arg11: memref<1x640xf32, #tpu.memory_space<vmem>>, %arg12: memref<8x128xf32, #tpu.memory_space<vmem>>, %arg13: memref<8x128xf32, #tpu.memory_space<vmem>>, %arg14: memref<8x128xf32, #tpu.memory_space<vmem>>) attributes {dimension_semantics = [#tpu.dimension_semantics<parallel>], iteration_bounds = array<i64: 2>, scalar_prefetch = 0 : i64, scratch_operands = 0 : i64, tpu.core_type = #tpu.core_type<tc>, window_params = [{transform_indices = @transform_0, window_bounds = array<i64: 8, 128>}, {transform_indices = @transform_1, window_bounds = array<i64: 8, 128>}, {transform_indices = @transform_2, window_bounds = array<i64: 8, 128>}, {pipeline_mode = #tpu.pipeline_mode<synchronous>, transform_indices = @transform_3, window_bounds = array<i64: 3, 128>}, {pipeline_mode = #tpu.pipeline_mode<synchronous>, transform_indices = @transform_4, window_bounds = array<i64: 3, 128>}, {pipeline_mode = #tpu.pipeline_mode<synchronous>, transform_indices = @transform_5, window_bounds = array<i64: 128, 640>}, {pipeline_mode = #tpu.pipeline_mode<synchronous>, transform_indices = @transform_6, window_bounds = array<i64: 1, 640>}, {pipeline_mode = #tpu.pipeline_mode<synchronous>, transform_indices = @transform_7, window_bounds = array<i64: 128, 640>}, {pipeline_mode = #tpu.pipeline_mode<synchronous>, transform_indices = @transform_8, window_bounds = array<i64: 1, 640>}, {pipeline_mode = #tpu.pipeline_mode<synchronous>, transform_indices = @transform_9, window_bounds = array<i64: 128, 640>}, {pipeline_mode = #tpu.pipeline_mode<synchronous>, transform_indices = @transform_10, window_bounds = array<i64: 1, 640>}, {transform_indices = @transform_11, window_bounds = array<i64: 8, 128>}, {transform_indices = @transform_12, window_bounds = array<i64: 8, 128>}, {transform_indices = @transform_13, window_bounds = array<i64: 8, 128>}]} {
    %c0 = arith.constant 0 : index
    %c0_0 = arith.constant 0 : index
    %0 = vector.load %arg1[%c0, %c0_0] : memref<8x128xf32, #tpu.memory_space<vmem>>, vector<8x128xf32>
    %c0_1 = arith.constant 0 : index
    %c0_2 = arith.constant 0 : index
    %1 = vector.load %arg4[%c0_1, %c0_2] : memref<3x128xf32, #tpu.memory_space<vmem>>, vector<1x128xf32>
    %c0_3 = arith.constant 0 : index
    %c0_4 = arith.constant 0 : index
    %2 = vector.load %arg5[%c0_3, %c0_4] : memref<3x128xf32, #tpu.memory_space<vmem>>, vector<1x128xf32>
    %cst = arith.constant dense<0.000000e+00> : vector<8xf32>
    %3 = vector.multi_reduction <add>, %0, %cst [1] : vector<8x128xf32> to vector<8xf32>
    %4 = vector.shape_cast %3 : vector<8xf32> to vector<8x1xf32>
    %cst_5 = arith.constant 1.280000e+02 : f32
    %5 = vector.broadcast %cst_5 : f32 to vector<8x1xf32>
    %6 = arith.divf %4, %5 : vector<8x1xf32>
    %7 = vector.broadcast %6 : vector<8x1xf32> to vector<8x128xf32>
    %8 = arith.subf %0, %7 : vector<8x128xf32>
    %9 = arith.mulf %8, %8 : vector<8x128xf32>
    %cst_6 = arith.constant dense<0.000000e+00> : vector<8xf32>
    %10 = vector.multi_reduction <add>, %9, %cst_6 [1] : vector<8x128xf32> to vector<8xf32>
    %11 = vector.shape_cast %10 : vector<8xf32> to vector<8x1xf32>
    %cst_7 = arith.constant 1.280000e+02 : f32
    %12 = vector.broadcast %cst_7 : f32 to vector<8x1xf32>
    %13 = arith.divf %11, %12 : vector<8x1xf32>
    %cst_8 = arith.constant 9.99999974E-6 : f32
    %14 = vector.broadcast %cst_8 : f32 to vector<8x1xf32>
    %15 = arith.addf %13, %14 : vector<8x1xf32>
    %16 = math.rsqrt %15 : vector<8x1xf32>
    %17 = vector.broadcast %16 : vector<8x1xf32> to vector<8x128xf32>
    %18 = arith.mulf %8, %17 : vector<8x128xf32>
    %19 = vector.broadcast %1 : vector<1x128xf32> to vector<8x128xf32>
    %20 = arith.mulf %18, %19 : vector<8x128xf32>
    %21 = vector.broadcast %2 : vector<1x128xf32> to vector<8x128xf32>
    %22 = arith.addf %20, %21 : vector<8x128xf32>
    %c0_9 = arith.constant 0 : index
    %c0_10 = arith.constant 0 : index
    %23 = vector.load %arg2[%c0_9, %c0_10] : memref<8x128xf32, #tpu.memory_space<vmem>>, vector<8x128xf32>
    %c1 = arith.constant 1 : index
    %c0_11 = arith.constant 0 : index
    %24 = vector.load %arg4[%c1, %c0_11] : memref<3x128xf32, #tpu.memory_space<vmem>>, vector<1x128xf32>
    %c1_12 = arith.constant 1 : index
    %c0_13 = arith.constant 0 : index
    %25 = vector.load %arg5[%c1_12, %c0_13] : memref<3x128xf32, #tpu.memory_space<vmem>>, vector<1x128xf32>
    %cst_14 = arith.constant dense<0.000000e+00> : vector<8xf32>
    %26 = vector.multi_reduction <add>, %23, %cst_14 [1] : vector<8x128xf32> to vector<8xf32>
    %27 = vector.shape_cast %26 : vector<8xf32> to vector<8x1xf32>
    %cst_15 = arith.constant 1.280000e+02 : f32
    %28 = vector.broadcast %cst_15 : f32 to vector<8x1xf32>
    %29 = arith.divf %27, %28 : vector<8x1xf32>
    %30 = vector.broadcast %29 : vector<8x1xf32> to vector<8x128xf32>
    %31 = arith.subf %23, %30 : vector<8x128xf32>
    %32 = arith.mulf %31, %31 : vector<8x128xf32>
    %cst_16 = arith.constant dense<0.000000e+00> : vector<8xf32>
    %33 = vector.multi_reduction <add>, %32, %cst_16 [1] : vector<8x128xf32> to vector<8xf32>
    %34 = vector.shape_cast %33 : vector<8xf32> to vector<8x1xf32>
    %cst_17 = arith.constant 1.280000e+02 : f32
    %35 = vector.broadcast %cst_17 : f32 to vector<8x1xf32>
    %36 = arith.divf %34, %35 : vector<8x1xf32>
    %cst_18 = arith.constant 9.99999974E-6 : f32
    %37 = vector.broadcast %cst_18 : f32 to vector<8x1xf32>
    %38 = arith.addf %36, %37 : vector<8x1xf32>
    %39 = math.rsqrt %38 : vector<8x1xf32>
    %40 = vector.broadcast %39 : vector<8x1xf32> to vector<8x128xf32>
    %41 = arith.mulf %31, %40 : vector<8x128xf32>
    %42 = vector.broadcast %24 : vector<1x128xf32> to vector<8x128xf32>
    %43 = arith.mulf %41, %42 : vector<8x128xf32>
    %44 = vector.broadcast %25 : vector<1x128xf32> to vector<8x128xf32>
    %45 = arith.addf %43, %44 : vector<8x128xf32>
    %c0_19 = arith.constant 0 : index
    %c0_20 = arith.constant 0 : index
    %46 = vector.load %arg3[%c0_19, %c0_20] : memref<8x128xf32, #tpu.memory_space<vmem>>, vector<8x128xf32>
    %c2 = arith.constant 2 : index
    %c0_21 = arith.constant 0 : index
    %47 = vector.load %arg4[%c2, %c0_21] : memref<3x128xf32, #tpu.memory_space<vmem>>, vector<1x128xf32>
    %c2_22 = arith.constant 2 : index
    %c0_23 = arith.constant 0 : index
    %48 = vector.load %arg5[%c2_22, %c0_23] : memref<3x128xf32, #tpu.memory_space<vmem>>, vector<1x128xf32>
    %cst_24 = arith.constant dense<0.000000e+00> : vector<8xf32>
    %49 = vector.multi_reduction <add>, %46, %cst_24 [1] : vector<8x128xf32> to vector<8xf32>
    %50 = vector.shape_cast %49 : vector<8xf32> to vector<8x1xf32>
    %cst_25 = arith.constant 1.280000e+02 : f32
    %51 = vector.broadcast %cst_25 : f32 to vector<8x1xf32>
    %52 = arith.divf %50, %51 : vector<8x1xf32>
    %53 = vector.broadcast %52 : vector<8x1xf32> to vector<8x128xf32>
    %54 = arith.subf %46, %53 : vector<8x128xf32>
    %55 = arith.mulf %54, %54 : vector<8x128xf32>
    %cst_26 = arith.constant dense<0.000000e+00> : vector<8xf32>
    %56 = vector.multi_reduction <add>, %55, %cst_26 [1] : vector<8x128xf32> to vector<8xf32>
    %57 = vector.shape_cast %56 : vector<8xf32> to vector<8x1xf32>
    %cst_27 = arith.constant 1.280000e+02 : f32
    %58 = vector.broadcast %cst_27 : f32 to vector<8x1xf32>
    %59 = arith.divf %57, %58 : vector<8x1xf32>
    %cst_28 = arith.constant 9.99999974E-6 : f32
    %60 = vector.broadcast %cst_28 : f32 to vector<8x1xf32>
    %61 = arith.addf %59, %60 : vector<8x1xf32>
    %62 = math.rsqrt %61 : vector<8x1xf32>
    %63 = vector.broadcast %62 : vector<8x1xf32> to vector<8x128xf32>
    %64 = arith.mulf %54, %63 : vector<8x128xf32>
    %65 = vector.broadcast %47 : vector<1x128xf32> to vector<8x128xf32>
    %66 = arith.mulf %64, %65 : vector<8x128xf32>
    %67 = vector.broadcast %48 : vector<1x128xf32> to vector<8x128xf32>
    %68 = arith.addf %66, %67 : vector<8x128xf32>
    %69 = arith.truncf %22 : vector<8x128xf32> to vector<8x128xbf16>
    %c0_29 = arith.constant 0 : index
    %c0_30 = arith.constant 0 : index
    %70 = vector.load %arg6[%c0_29, %c0_30] : memref<128x640xbf16, #tpu.memory_space<vmem>>, vector<128x640xbf16>
    %cst_31 = arith.constant dense<0.000000e+00> : vector<8x640xf32>
    %71 = tpu.matmul %69, %70, %cst_31 {dimension_numbers = #tpu.dot_dimension_numbers<[1], [0], [0], [1], [0, 0, 1, 1], [], []>} : vector<8x128xbf16>, vector<128x640xbf16>, vector<8x640xf32> -> vector<8x640xf32>
    %72 = vector.extract_strided_slice %71 {offsets = [0, 0], sizes = [8, 512], strides = [1, 1]} : vector<8x640xf32> to vector<8x512xf32>
    %c0_32 = arith.constant 0 : index
    %c0_33 = arith.constant 0 : index
    %73 = vector.load %arg7[%c0_32, %c0_33] : memref<1x640xf32, #tpu.memory_space<vmem>>, vector<1x512xf32>
    %74 = vector.broadcast %73 : vector<1x512xf32> to vector<8x512xf32>
    %75 = arith.addf %72, %74 : vector<8x512xf32>
    %cst_34 = arith.constant 0.000000e+00 : f32
    %76 = vector.broadcast %cst_34 : f32 to vector<8x512xf32>
    %77 = arith.maximumf %75, %76 : vector<8x512xf32>
    %78 = vector.extract_strided_slice %71 {offsets = [0, 512], sizes = [8, 12], strides = [1, 1]} : vector<8x640xf32> to vector<8x12xf32>
    %c0_35 = arith.constant 0 : index
    %c512 = arith.constant 512 : index
    %79 = vector.load %arg7[%c0_35, %c512] : memref<1x640xf32, #tpu.memory_space<vmem>>, vector<1x12xf32>
    %80 = vector.broadcast %79 : vector<1x12xf32> to vector<8x12xf32>
    %81 = arith.addf %78, %80 : vector<8x12xf32>
    %cst_36 = arith.constant dense<0xFF800000> : vector<8xf32>
    %82 = vector.multi_reduction <maximumf>, %81, %cst_36 [1] : vector<8x12xf32> to vector<8xf32>
    %83 = vector.shape_cast %82 : vector<8xf32> to vector<8x1xf32>
    %84 = vector.broadcast %83 : vector<8x1xf32> to vector<8x12xf32>
    %85 = arith.subf %81, %84 : vector<8x12xf32>
    %86 = math.exp %85 : vector<8x12xf32>
    %cst_37 = arith.constant dense<0.000000e+00> : vector<8xf32>
    %87 = vector.multi_reduction <add>, %86, %cst_37 [1] : vector<8x12xf32> to vector<8xf32>
    %88 = vector.shape_cast %87 : vector<8xf32> to vector<8x1xf32>
    %89 = tpu.reciprocal %88 {approx = true} : vector<8x1xf32> -> vector<8x1xf32>
    %90 = vector.broadcast %89 : vector<8x1xf32> to vector<8x12xf32>
    %91 = arith.mulf %86, %90 : vector<8x12xf32>
    %92 = arith.truncf %45 : vector<8x128xf32> to vector<8x128xbf16>
    %c0_38 = arith.constant 0 : index
    %c0_39 = arith.constant 0 : index
    %93 = vector.load %arg8[%c0_38, %c0_39] : memref<128x640xbf16, #tpu.memory_space<vmem>>, vector<128x640xbf16>
    %cst_40 = arith.constant dense<0.000000e+00> : vector<8x640xf32>
    %94 = tpu.matmul %92, %93, %cst_40 {dimension_numbers = #tpu.dot_dimension_numbers<[1], [0], [0], [1], [0, 0, 1, 1], [], []>} : vector<8x128xbf16>, vector<128x640xbf16>, vector<8x640xf32> -> vector<8x640xf32>
    %95 = vector.extract_strided_slice %94 {offsets = [0, 0], sizes = [8, 512], strides = [1, 1]} : vector<8x640xf32> to vector<8x512xf32>
    %c0_41 = arith.constant 0 : index
    %c0_42 = arith.constant 0 : index
    %96 = vector.load %arg9[%c0_41, %c0_42] : memref<1x640xf32, #tpu.memory_space<vmem>>, vector<1x512xf32>
    %97 = vector.broadcast %96 : vector<1x512xf32> to vector<8x512xf32>
    %98 = arith.addf %95, %97 : vector<8x512xf32>
    %cst_43 = arith.constant 0.000000e+00 : f32
    %99 = vector.broadcast %cst_43 : f32 to vector<8x512xf32>
    %100 = arith.maximumf %98, %99 : vector<8x512xf32>
    %101 = vector.extract_strided_slice %94 {offsets = [0, 512], sizes = [8, 8], strides = [1, 1]} : vector<8x640xf32> to vector<8x8xf32>
    %c0_44 = arith.constant 0 : index
    %c512_45 = arith.constant 512 : index
    %102 = vector.load %arg9[%c0_44, %c512_45] : memref<1x640xf32, #tpu.memory_space<vmem>>, vector<1x8xf32>
    %103 = vector.broadcast %102 : vector<1x8xf32> to vector<8x8xf32>
    %104 = arith.addf %101, %103 : vector<8x8xf32>
    %cst_46 = arith.constant dense<0xFF800000> : vector<8xf32>
    %105 = vector.multi_reduction <maximumf>, %104, %cst_46 [1] : vector<8x8xf32> to vector<8xf32>
    %106 = vector.shape_cast %105 : vector<8xf32> to vector<8x1xf32>
    %107 = vector.broadcast %106 : vector<8x1xf32> to vector<8x8xf32>
    %108 = arith.subf %104, %107 : vector<8x8xf32>
    %109 = math.exp %108 : vector<8x8xf32>
    %cst_47 = arith.constant dense<0.000000e+00> : vector<8xf32>
    %110 = vector.multi_reduction <add>, %109, %cst_47 [1] : vector<8x8xf32> to vector<8xf32>
    %111 = vector.shape_cast %110 : vector<8xf32> to vector<8x1xf32>
    %112 = tpu.reciprocal %111 {approx = true} : vector<8x1xf32> -> vector<8x1xf32>
    %113 = vector.broadcast %112 : vector<8x1xf32> to vector<8x8xf32>
    %114 = arith.mulf %109, %113 : vector<8x8xf32>
    %115 = arith.truncf %68 : vector<8x128xf32> to vector<8x128xbf16>
    %c0_48 = arith.constant 0 : index
    %c0_49 = arith.constant 0 : index
    %116 = vector.load %arg10[%c0_48, %c0_49] : memref<128x640xbf16, #tpu.memory_space<vmem>>, vector<128x640xbf16>
    %cst_50 = arith.constant dense<0.000000e+00> : vector<8x640xf32>
    %117 = tpu.matmul %115, %116, %cst_50 {dimension_numbers = #tpu.dot_dimension_numbers<[1], [0], [0], [1], [0, 0, 1, 1], [], []>} : vector<8x128xbf16>, vector<128x640xbf16>, vector<8x640xf32> -> vector<8x640xf32>
    %118 = vector.extract_strided_slice %117 {offsets = [0, 0], sizes = [8, 512], strides = [1, 1]} : vector<8x640xf32> to vector<8x512xf32>
    %c0_51 = arith.constant 0 : index
    %c0_52 = arith.constant 0 : index
    %119 = vector.load %arg11[%c0_51, %c0_52] : memref<1x640xf32, #tpu.memory_space<vmem>>, vector<1x512xf32>
    %120 = vector.broadcast %119 : vector<1x512xf32> to vector<8x512xf32>
    %121 = arith.addf %118, %120 : vector<8x512xf32>
    %cst_53 = arith.constant 0.000000e+00 : f32
    %122 = vector.broadcast %cst_53 : f32 to vector<8x512xf32>
    %123 = arith.maximumf %121, %122 : vector<8x512xf32>
    %124 = vector.extract_strided_slice %117 {offsets = [0, 512], sizes = [8, 8], strides = [1, 1]} : vector<8x640xf32> to vector<8x8xf32>
    %c0_54 = arith.constant 0 : index
    %c512_55 = arith.constant 512 : index
    %125 = vector.load %arg11[%c0_54, %c512_55] : memref<1x640xf32, #tpu.memory_space<vmem>>, vector<1x8xf32>
    %126 = vector.broadcast %125 : vector<1x8xf32> to vector<8x8xf32>
    %127 = arith.addf %124, %126 : vector<8x8xf32>
    %cst_56 = arith.constant dense<0xFF800000> : vector<8xf32>
    %128 = vector.multi_reduction <maximumf>, %127, %cst_56 [1] : vector<8x8xf32> to vector<8xf32>
    %129 = vector.shape_cast %128 : vector<8xf32> to vector<8x1xf32>
    %130 = vector.broadcast %129 : vector<8x1xf32> to vector<8x8xf32>
    %131 = arith.subf %127, %130 : vector<8x8xf32>
    %132 = math.exp %131 : vector<8x8xf32>
    %cst_57 = arith.constant dense<0.000000e+00> : vector<8xf32>
    %133 = vector.multi_reduction <add>, %132, %cst_57 [1] : vector<8x8xf32> to vector<8xf32>
    %134 = vector.shape_cast %133 : vector<8xf32> to vector<8x1xf32>
    %135 = tpu.reciprocal %134 {approx = true} : vector<8x1xf32> -> vector<8x1xf32>
    %136 = vector.broadcast %135 : vector<8x1xf32> to vector<8x8xf32>
    %137 = arith.mulf %132, %136 : vector<8x8xf32>
    %138 = vector.extract_strided_slice %91 {offsets = [0, 0], sizes = [8, 1], strides = [1, 1]} : vector<8x12xf32> to vector<8x1xf32>
    %139 = vector.extract_strided_slice %100 {offsets = [0, 0], sizes = [8, 128], strides = [1, 1]} : vector<8x512xf32> to vector<8x128xf32>
    %140 = vector.broadcast %138 : vector<8x1xf32> to vector<8x128xf32>
    %141 = arith.mulf %140, %139 : vector<8x128xf32>
    %142 = vector.extract_strided_slice %91 {offsets = [0, 1], sizes = [8, 1], strides = [1, 1]} : vector<8x12xf32> to vector<8x1xf32>
    %143 = vector.extract_strided_slice %100 {offsets = [0, 128], sizes = [8, 128], strides = [1, 1]} : vector<8x512xf32> to vector<8x128xf32>
    %144 = vector.broadcast %142 : vector<8x1xf32> to vector<8x128xf32>
    %145 = arith.mulf %144, %143 : vector<8x128xf32>
    %146 = vector.extract_strided_slice %91 {offsets = [0, 2], sizes = [8, 1], strides = [1, 1]} : vector<8x12xf32> to vector<8x1xf32>
    %147 = vector.extract_strided_slice %100 {offsets = [0, 256], sizes = [8, 128], strides = [1, 1]} : vector<8x512xf32> to vector<8x128xf32>
    %148 = vector.broadcast %146 : vector<8x1xf32> to vector<8x128xf32>
    %149 = arith.mulf %148, %147 : vector<8x128xf32>
    %150 = vector.extract_strided_slice %91 {offsets = [0, 3], sizes = [8, 1], strides = [1, 1]} : vector<8x12xf32> to vector<8x1xf32>
    %151 = vector.extract_strided_slice %100 {offsets = [0, 384], sizes = [8, 128], strides = [1, 1]} : vector<8x512xf32> to vector<8x128xf32>
    %152 = vector.broadcast %150 : vector<8x1xf32> to vector<8x128xf32>
    %153 = arith.mulf %152, %151 : vector<8x128xf32>
    %154 = arith.addf %141, %145 : vector<8x128xf32>
    %155 = arith.addf %149, %153 : vector<8x128xf32>
    %156 = arith.addf %154, %155 : vector<8x128xf32>
    %157 = vector.extract_strided_slice %91 {offsets = [0, 4], sizes = [8, 1], strides = [1, 1]} : vector<8x12xf32> to vector<8x1xf32>
    %158 = vector.extract_strided_slice %77 {offsets = [0, 0], sizes = [8, 128], strides = [1, 1]} : vector<8x512xf32> to vector<8x128xf32>
    %159 = vector.broadcast %157 : vector<8x1xf32> to vector<8x128xf32>
    %160 = arith.mulf %159, %158 : vector<8x128xf32>
    %161 = vector.extract_strided_slice %91 {offsets = [0, 5], sizes = [8, 1], strides = [1, 1]} : vector<8x12xf32> to vector<8x1xf32>
    %162 = vector.extract_strided_slice %77 {offsets = [0, 128], sizes = [8, 128], strides = [1, 1]} : vector<8x512xf32> to vector<8x128xf32>
    %163 = vector.broadcast %161 : vector<8x1xf32> to vector<8x128xf32>
    %164 = arith.mulf %163, %162 : vector<8x128xf32>
    %165 = vector.extract_strided_slice %91 {offsets = [0, 6], sizes = [8, 1], strides = [1, 1]} : vector<8x12xf32> to vector<8x1xf32>
    %166 = vector.extract_strided_slice %77 {offsets = [0, 256], sizes = [8, 128], strides = [1, 1]} : vector<8x512xf32> to vector<8x128xf32>
    %167 = vector.broadcast %165 : vector<8x1xf32> to vector<8x128xf32>
    %168 = arith.mulf %167, %166 : vector<8x128xf32>
    %169 = vector.extract_strided_slice %91 {offsets = [0, 7], sizes = [8, 1], strides = [1, 1]} : vector<8x12xf32> to vector<8x1xf32>
    %170 = vector.extract_strided_slice %77 {offsets = [0, 384], sizes = [8, 128], strides = [1, 1]} : vector<8x512xf32> to vector<8x128xf32>
    %171 = vector.broadcast %169 : vector<8x1xf32> to vector<8x128xf32>
    %172 = arith.mulf %171, %170 : vector<8x128xf32>
    %173 = arith.addf %160, %164 : vector<8x128xf32>
    %174 = arith.addf %168, %172 : vector<8x128xf32>
    %175 = arith.addf %173, %174 : vector<8x128xf32>
    %176 = vector.extract_strided_slice %91 {offsets = [0, 8], sizes = [8, 1], strides = [1, 1]} : vector<8x12xf32> to vector<8x1xf32>
    %177 = vector.extract_strided_slice %123 {offsets = [0, 0], sizes = [8, 128], strides = [1, 1]} : vector<8x512xf32> to vector<8x128xf32>
    %178 = vector.broadcast %176 : vector<8x1xf32> to vector<8x128xf32>
    %179 = arith.mulf %178, %177 : vector<8x128xf32>
    %180 = vector.extract_strided_slice %91 {offsets = [0, 9], sizes = [8, 1], strides = [1, 1]} : vector<8x12xf32> to vector<8x1xf32>
    %181 = vector.extract_strided_slice %123 {offsets = [0, 128], sizes = [8, 128], strides = [1, 1]} : vector<8x512xf32> to vector<8x128xf32>
    %182 = vector.broadcast %180 : vector<8x1xf32> to vector<8x128xf32>
    %183 = arith.mulf %182, %181 : vector<8x128xf32>
    %184 = vector.extract_strided_slice %91 {offsets = [0, 10], sizes = [8, 1], strides = [1, 1]} : vector<8x12xf32> to vector<8x1xf32>
    %185 = vector.extract_strided_slice %123 {offsets = [0, 256], sizes = [8, 128], strides = [1, 1]} : vector<8x512xf32> to vector<8x128xf32>
    %186 = vector.broadcast %184 : vector<8x1xf32> to vector<8x128xf32>
    %187 = arith.mulf %186, %185 : vector<8x128xf32>
    %188 = vector.extract_strided_slice %91 {offsets = [0, 11], sizes = [8, 1], strides = [1, 1]} : vector<8x12xf32> to vector<8x1xf32>
    %189 = vector.extract_strided_slice %123 {offsets = [0, 384], sizes = [8, 128], strides = [1, 1]} : vector<8x512xf32> to vector<8x128xf32>
    %190 = vector.broadcast %188 : vector<8x1xf32> to vector<8x128xf32>
    %191 = arith.mulf %190, %189 : vector<8x128xf32>
    %192 = arith.addf %179, %183 : vector<8x128xf32>
    %193 = arith.addf %187, %191 : vector<8x128xf32>
    %194 = arith.addf %192, %193 : vector<8x128xf32>
    %195 = arith.addf %156, %175 : vector<8x128xf32>
    %196 = arith.addf %195, %194 : vector<8x128xf32>
    %c0_58 = arith.constant 0 : index
    %c0_59 = arith.constant 0 : index
    %197 = vector.load %arg12[%c0_58, %c0_59] : memref<8x128xf32, #tpu.memory_space<vmem>>, vector<8x128xf32>
    tpu.vector_store %arg12[%c0_58, %c0_59], %196 {strides = array<i32>} : memref<8x128xf32, #tpu.memory_space<vmem>>, vector<8x128xf32>,
    %198 = vector.extract_strided_slice %114 {offsets = [0, 0], sizes = [8, 1], strides = [1, 1]} : vector<8x8xf32> to vector<8x1xf32>
    %199 = vector.extract_strided_slice %100 {offsets = [0, 0], sizes = [8, 128], strides = [1, 1]} : vector<8x512xf32> to vector<8x128xf32>
    %200 = vector.broadcast %198 : vector<8x1xf32> to vector<8x128xf32>
    %201 = arith.mulf %200, %199 : vector<8x128xf32>
    %202 = vector.extract_strided_slice %114 {offsets = [0, 1], sizes = [8, 1], strides = [1, 1]} : vector<8x8xf32> to vector<8x1xf32>
    %203 = vector.extract_strided_slice %100 {offsets = [0, 128], sizes = [8, 128], strides = [1, 1]} : vector<8x512xf32> to vector<8x128xf32>
    %204 = vector.broadcast %202 : vector<8x1xf32> to vector<8x128xf32>
    %205 = arith.mulf %204, %203 : vector<8x128xf32>
    %206 = vector.extract_strided_slice %114 {offsets = [0, 2], sizes = [8, 1], strides = [1, 1]} : vector<8x8xf32> to vector<8x1xf32>
    %207 = vector.extract_strided_slice %100 {offsets = [0, 256], sizes = [8, 128], strides = [1, 1]} : vector<8x512xf32> to vector<8x128xf32>
    %208 = vector.broadcast %206 : vector<8x1xf32> to vector<8x128xf32>
    %209 = arith.mulf %208, %207 : vector<8x128xf32>
    %210 = vector.extract_strided_slice %114 {offsets = [0, 3], sizes = [8, 1], strides = [1, 1]} : vector<8x8xf32> to vector<8x1xf32>
    %211 = vector.extract_strided_slice %100 {offsets = [0, 384], sizes = [8, 128], strides = [1, 1]} : vector<8x512xf32> to vector<8x128xf32>
    %212 = vector.broadcast %210 : vector<8x1xf32> to vector<8x128xf32>
    %213 = arith.mulf %212, %211 : vector<8x128xf32>
    %214 = arith.addf %201, %205 : vector<8x128xf32>
    %215 = arith.addf %209, %213 : vector<8x128xf32>
    %216 = arith.addf %214, %215 : vector<8x128xf32>
    %217 = vector.extract_strided_slice %114 {offsets = [0, 4], sizes = [8, 1], strides = [1, 1]} : vector<8x8xf32> to vector<8x1xf32>
    %218 = vector.extract_strided_slice %77 {offsets = [0, 0], sizes = [8, 128], strides = [1, 1]} : vector<8x512xf32> to vector<8x128xf32>
    %219 = vector.broadcast %217 : vector<8x1xf32> to vector<8x128xf32>
    %220 = arith.mulf %219, %218 : vector<8x128xf32>
    %221 = vector.extract_strided_slice %114 {offsets = [0, 5], sizes = [8, 1], strides = [1, 1]} : vector<8x8xf32> to vector<8x1xf32>
    %222 = vector.extract_strided_slice %77 {offsets = [0, 128], sizes = [8, 128], strides = [1, 1]} : vector<8x512xf32> to vector<8x128xf32>
    %223 = vector.broadcast %221 : vector<8x1xf32> to vector<8x128xf32>
    %224 = arith.mulf %223, %222 : vector<8x128xf32>
    %225 = vector.extract_strided_slice %114 {offsets = [0, 6], sizes = [8, 1], strides = [1, 1]} : vector<8x8xf32> to vector<8x1xf32>
    %226 = vector.extract_strided_slice %77 {offsets = [0, 256], sizes = [8, 128], strides = [1, 1]} : vector<8x512xf32> to vector<8x128xf32>
    %227 = vector.broadcast %225 : vector<8x1xf32> to vector<8x128xf32>
    %228 = arith.mulf %227, %226 : vector<8x128xf32>
    %229 = vector.extract_strided_slice %114 {offsets = [0, 7], sizes = [8, 1], strides = [1, 1]} : vector<8x8xf32> to vector<8x1xf32>
    %230 = vector.extract_strided_slice %77 {offsets = [0, 384], sizes = [8, 128], strides = [1, 1]} : vector<8x512xf32> to vector<8x128xf32>
    %231 = vector.broadcast %229 : vector<8x1xf32> to vector<8x128xf32>
    %232 = arith.mulf %231, %230 : vector<8x128xf32>
    %233 = arith.addf %220, %224 : vector<8x128xf32>
    %234 = arith.addf %228, %232 : vector<8x128xf32>
    %235 = arith.addf %233, %234 : vector<8x128xf32>
    %236 = arith.addf %216, %235 : vector<8x128xf32>
    %c0_60 = arith.constant 0 : index
    %c0_61 = arith.constant 0 : index
    %237 = vector.load %arg13[%c0_60, %c0_61] : memref<8x128xf32, #tpu.memory_space<vmem>>, vector<8x128xf32>
    tpu.vector_store %arg13[%c0_60, %c0_61], %236 {strides = array<i32>} : memref<8x128xf32, #tpu.memory_space<vmem>>, vector<8x128xf32>,
    %238 = vector.extract_strided_slice %137 {offsets = [0, 0], sizes = [8, 1], strides = [1, 1]} : vector<8x8xf32> to vector<8x1xf32>
    %239 = vector.extract_strided_slice %123 {offsets = [0, 0], sizes = [8, 128], strides = [1, 1]} : vector<8x512xf32> to vector<8x128xf32>
    %240 = vector.broadcast %238 : vector<8x1xf32> to vector<8x128xf32>
    %241 = arith.mulf %240, %239 : vector<8x128xf32>
    %242 = vector.extract_strided_slice %137 {offsets = [0, 1], sizes = [8, 1], strides = [1, 1]} : vector<8x8xf32> to vector<8x1xf32>
    %243 = vector.extract_strided_slice %123 {offsets = [0, 128], sizes = [8, 128], strides = [1, 1]} : vector<8x512xf32> to vector<8x128xf32>
    %244 = vector.broadcast %242 : vector<8x1xf32> to vector<8x128xf32>
    %245 = arith.mulf %244, %243 : vector<8x128xf32>
    %246 = vector.extract_strided_slice %137 {offsets = [0, 2], sizes = [8, 1], strides = [1, 1]} : vector<8x8xf32> to vector<8x1xf32>
    %247 = vector.extract_strided_slice %123 {offsets = [0, 256], sizes = [8, 128], strides = [1, 1]} : vector<8x512xf32> to vector<8x128xf32>
    %248 = vector.broadcast %246 : vector<8x1xf32> to vector<8x128xf32>
    %249 = arith.mulf %248, %247 : vector<8x128xf32>
    %250 = vector.extract_strided_slice %137 {offsets = [0, 3], sizes = [8, 1], strides = [1, 1]} : vector<8x8xf32> to vector<8x1xf32>
    %251 = vector.extract_strided_slice %123 {offsets = [0, 384], sizes = [8, 128], strides = [1, 1]} : vector<8x512xf32> to vector<8x128xf32>
    %252 = vector.broadcast %250 : vector<8x1xf32> to vector<8x128xf32>
    %253 = arith.mulf %252, %251 : vector<8x128xf32>
    %254 = arith.addf %241, %245 : vector<8x128xf32>
    %255 = arith.addf %249, %253 : vector<8x128xf32>
    %256 = arith.addf %254, %255 : vector<8x128xf32>
    %257 = vector.extract_strided_slice %137 {offsets = [0, 4], sizes = [8, 1], strides = [1, 1]} : vector<8x8xf32> to vector<8x1xf32>
    %258 = vector.extract_strided_slice %77 {offsets = [0, 0], sizes = [8, 128], strides = [1, 1]} : vector<8x512xf32> to vector<8x128xf32>
    %259 = vector.broadcast %257 : vector<8x1xf32> to vector<8x128xf32>
    %260 = arith.mulf %259, %258 : vector<8x128xf32>
    %261 = vector.extract_strided_slice %137 {offsets = [0, 5], sizes = [8, 1], strides = [1, 1]} : vector<8x8xf32> to vector<8x1xf32>
    %262 = vector.extract_strided_slice %77 {offsets = [0, 128], sizes = [8, 128], strides = [1, 1]} : vector<8x512xf32> to vector<8x128xf32>
    %263 = vector.broadcast %261 : vector<8x1xf32> to vector<8x128xf32>
    %264 = arith.mulf %263, %262 : vector<8x128xf32>
    %265 = vector.extract_strided_slice %137 {offsets = [0, 6], sizes = [8, 1], strides = [1, 1]} : vector<8x8xf32> to vector<8x1xf32>
    %266 = vector.extract_strided_slice %77 {offsets = [0, 256], sizes = [8, 128], strides = [1, 1]} : vector<8x512xf32> to vector<8x128xf32>
    %267 = vector.broadcast %265 : vector<8x1xf32> to vector<8x128xf32>
    %268 = arith.mulf %267, %266 : vector<8x128xf32>
    %269 = vector.extract_strided_slice %137 {offsets = [0, 7], sizes = [8, 1], strides = [1, 1]} : vector<8x8xf32> to vector<8x1xf32>
    %270 = vector.extract_strided_slice %77 {offsets = [0, 384], sizes = [8, 128], strides = [1, 1]} : vector<8x512xf32> to vector<8x128xf32>
    %271 = vector.broadcast %269 : vector<8x1xf32> to vector<8x128xf32>
    %272 = arith.mulf %271, %270 : vector<8x128xf32>
    %273 = arith.addf %260, %264 : vector<8x128xf32>
    %274 = arith.addf %268, %272 : vector<8x128xf32>
    %275 = arith.addf %273, %274 : vector<8x128xf32>
    %276 = arith.addf %256, %275 : vector<8x128xf32>
    %c0_62 = arith.constant 0 : index
    %c0_63 = arith.constant 0 : index
    %277 = vector.load %arg14[%c0_62, %c0_63] : memref<8x128xf32, #tpu.memory_space<vmem>>, vector<8x128xf32>
    tpu.vector_store %arg14[%c0_62, %c0_63], %276 {strides = array<i32>} : memref<8x128xf32, #tpu.memory_space<vmem>>, vector<8x128xf32>,
    return
  }
  func.func @transform_0(%arg0: i32) -> (i32, i32) {
    %c0_i32 = arith.constant 0 : i32
    %c0_i32_0 = arith.constant 0 : i32
    return %arg0, %c0_i32 : i32, i32
  }
  func.func @transform_1(%arg0: i32) -> (i32, i32) {
    %c0_i32 = arith.constant 0 : i32
    %c0_i32_0 = arith.constant 0 : i32
    return %arg0, %c0_i32 : i32, i32
  }
  func.func @transform_2(%arg0: i32) -> (i32, i32) {
    %c0_i32 = arith.constant 0 : i32
    %c0_i32_0 = arith.constant 0 : i32
    return %arg0, %c0_i32 : i32, i32
  }
  func.func @transform_3(%arg0: i32) -> (i32, i32) {
    %c0_i32 = arith.constant 0 : i32
    %c0_i32_0 = arith.constant 0 : i32
    %c0_i32_1 = arith.constant 0 : i32
    return %c0_i32, %c0_i32_0 : i32, i32
  }
  func.func @transform_4(%arg0: i32) -> (i32, i32) {
    %c0_i32 = arith.constant 0 : i32
    %c0_i32_0 = arith.constant 0 : i32
    %c0_i32_1 = arith.constant 0 : i32
    return %c0_i32, %c0_i32_0 : i32, i32
  }
  func.func @transform_5(%arg0: i32) -> (i32, i32) {
    %c0_i32 = arith.constant 0 : i32
    %c0_i32_0 = arith.constant 0 : i32
    %c0_i32_1 = arith.constant 0 : i32
    return %c0_i32, %c0_i32_0 : i32, i32
  }
  func.func @transform_6(%arg0: i32) -> (i32, i32) {
    %c0_i32 = arith.constant 0 : i32
    %c0_i32_0 = arith.constant 0 : i32
    %c0_i32_1 = arith.constant 0 : i32
    return %c0_i32, %c0_i32_0 : i32, i32
  }
  func.func @transform_7(%arg0: i32) -> (i32, i32) {
    %c0_i32 = arith.constant 0 : i32
    %c0_i32_0 = arith.constant 0 : i32
    %c0_i32_1 = arith.constant 0 : i32
    return %c0_i32, %c0_i32_0 : i32, i32
  }
  func.func @transform_8(%arg0: i32) -> (i32, i32) {
    %c0_i32 = arith.constant 0 : i32
    %c0_i32_0 = arith.constant 0 : i32
    %c0_i32_1 = arith.constant 0 : i32
    return %c0_i32, %c0_i32_0 : i32, i32
  }
  func.func @transform_9(%arg0: i32) -> (i32, i32) {
    %c0_i32 = arith.constant 0 : i32
    %c0_i32_0 = arith.constant 0 : i32
    %c0_i32_1 = arith.constant 0 : i32
    return %c0_i32, %c0_i32_0 : i32, i32
  }
  func.func @transform_10(%arg0: i32) -> (i32, i32) {
    %c0_i32 = arith.constant 0 : i32
    %c0_i32_0 = arith.constant 0 : i32
    %c0_i32_1 = arith.constant 0 : i32
    return %c0_i32, %c0_i32_0 : i32, i32
  }
  func.func @transform_11(%arg0: i32) -> (i32, i32) {
    %c0_i32 = arith.constant 0 : i32
    %c0_i32_0 = arith.constant 0 : i32
    return %arg0, %c0_i32 : i32, i32
  }
  func.func @transform_12(%arg0: i32) -> (i32, i32) {
    %c0_i32 = arith.constant 0 : i32
    %c0_i32_0 = arith.constant 0 : i32
    return %arg0, %c0_i32 : i32, i32
  }
  func.func @transform_13(%arg0: i32) -> (i32, i32) {
    %c0_i32 = arith.constant 0 : i32
    %c0_i32_0 = arith.constant 0 : i32
    return %arg0, %c0_i32 : i32, i32
  }
}

</mosaic_0001>

<bundles_post_ra>
// kernel: tpu_custom_call.1
= control target key start
LH: loop header
LB: loop body
LE: loop exit
PB: predicated region body
PF: predicated region fallthrough
CT: control target
= control target key end

     0   :  { %s4177_s0 = inlined_call_operand.hbm [shape: f32[16,128], index: 0, kind: input, shape index: {}]   ;;  %s4178_s1 = inlined_call_operand.hbm [shape: f32[16,128], index: 1, kind: input, shape index: {}]   ;;  %s4179_s2 = inlined_call_operand.hbm [shape: f32[16,128], index: 2, kind: input, shape index: {}]   ;;  %s4180_s3 = inlined_call_operand.hbm [shape: f32[3,128], index: 3, kind: input, shape index: {}]   ;;  %s4181_s4 = inlined_call_operand.hbm [shape: f32[3,128], index: 4, kind: input, shape index: {}]   ;;  %s4182_s5 = inlined_call_operand.hbm [shape: bf16[128,640], index: 5, kind: input, shape index: {}]   ;;  %s4183_s6 = inlined_call_operand.vmem [shape: f32[1,640], index: 6, kind: input, shape index: {}]   ;;  %s4184_s7 = inlined_call_operand.hbm [shape: bf16[128,640], index: 7, kind: input, shape index: {}]   ;;  %s4185_s8 = inlined_call_operand.vmem [shape: f32[1,640], index: 8, kind: input, shape index: {}]   ;;  %s4186_s9 = inlined_call_operand.hbm [shape: bf16[128,640], index: 9, kind: input, shape index: {}]   ;;  %s4187_s10 = inlined_call_operand.vmem [shape: f32[1,640], index: 10, kind: input, shape index: {}]   ;;  %s4188_s11 = inlined_call_operand.hbm [shape: f32[16,128], index: 11, kind: output, shape index: {0}]   ;;  %s4189_s12 = inlined_call_operand.hbm [shape: f32[16,128], index: 12, kind: output, shape index: {1}]   ;;  %s4190_s13 = inlined_call_operand.hbm [shape: f32[16,128], index: 13, kind: output, shape index: {2}]  }
   0x1   :  { %4222 = sst [smem:[#allocation33_spill]] %s4178_s1 }
   0x2   :  { %4223 = sst [smem:[#allocation34_spill]] %s4180_s3 }
   0x3   :  { %4224 = sst [smem:[#allocation35_spill]] %s4182_s5 }
   0x4   :  { %4225 = sst [smem:[#allocation36_spill]] %s4185_s8 }
   0x5   :  { %4226 = sst [smem:[#allocation37_spill]] %s4187_s10 }
   0x6   :  { %4227 = sst [smem:[#allocation38_spill]] %s4188_s11 }
   0x7   :  { %4228 = sst [smem:[#allocation39_spill]] %s4189_s12 }
   0x8   :  { %4229 = sst [smem:[#allocation40_spill]] %s4190_s13 }
   0x9   :  { %19 = vsyncpa [#allocation3], 0 }
   0xa   :  { %21 = vsyncpa [#allocation3 + $0x1], 0 }
   0xb   :  { %22 = vsyncpa [#allocation6], 0 }
   0xc   :  { %24 = vsyncpa [#allocation6 + $0x1], 0 }
   0xd   :  { %25 = vsyncpa [#allocation9], 0 }
   0xe   :  { %26 = vsyncpa [#allocation12], 0 }
   0xf   :  { %27 = vsyncpa [#allocation15], 0 }
  0x10   :  { %28 = vsyncpa [#allocation4], 0 }
  0x11   :  { %30 = vsyncpa [#allocation4 + $0x1], 0 }
  0x12   :  { %31 = vsyncpa [#allocation18], 0 }
  0x13   :  { %33 = vsyncpa [#allocation18 + $0x1], 0  ;;  %s3485_s25 = smov 0   ;;  %s3487_s26 = smov 0  }
  0x14   :  { %s3489_s27 = smov 0   ;;  %s3491_s28 = smov 0  }
  0x15 LB: > { %4230 = sst [smem:[#allocation27_spill]] %s3374_s25  ;;  %s3388_s29 = smov [#allocation8]   ;;  %s3386_s28 = sphi %s3491_s28, %s4277_s28   ;;  %s3382_s27 = sphi %s3489_s27, %s4281_s27   ;;  %s3378_s26 = sphi %s3487_s26, %s4280_s26   ;;  %s3374_s25 = sphi %s3485_s25, %s4279_s25  }
  0x16   : > { %4231 = sst [smem:[#allocation28_spill]] %s3386_s28  ;;  %s381_s30 = sshll.u32 %s3388_s29, 4  ;;  %s382_s30 = int_to_ptr.vmem [resolvable:$true] %s381_s30 }
  0x17   : > { %s3506_s14 = sadd.s32 4294967295, %s3386_s28   ;;  %p2418_p0 = scmp.ge.s32.totalorder %s3386_s28, 1 }
  0x18   : > { %p4191_p1 = scmp.eq.s32.totalorder %s3506_s14, 0  ;;  %p368_p2 = scmp.lt.s32.totalorder %s3386_s28, 3 }
  0x19   : > { %s3389_s16 = smov [#allocation11]   ;;  %s4234_s3 = sld [smem:[#allocation34_spill]] }
  0x1a   : > { %p3511_p3 = pnand %p2418_p0, %p368_p2  ;;  %s402_s17 = sshll.u32 %s3389_s16, 4  ;;  %s3518_s17 = int_to_ptr.vmem [resolvable:$true] %s402_s17 }
  0x1c   : > { %s4232_s15 = scalar_select %p3511_p3, 1, 0 }
  0x1d   : > { %p2699_p5 = pneg %p3511_p3 }
  0x1f   : > { %p3522_p6 = pnand %p2699_p5, %p4191_p1  ;;  %s3014_s21 = scalar_lea.hbm %s4234_s3, 64 }
  0x20   : > { %p3015_p7 = scmp.ne.s32.totalorder %s4234_s3, %s3014_s21  ;;  %p3021_p11 = scmp.lt.u32.totalorder %s3014_s21, %s4234_s3 }
  0x21   : > { %s4233_s18 = scalar_select %p3522_p6, 1, 0 }
  0x22   : > { %p3534_p8 = pneg %p3522_p6 }
  0x24   : > { %s4235_s24 = scalar_select %p3534_p8, 1, 0 }
  0x25   : > { %p3017_p9 = pnand %p3534_p8, %p3015_p7 }
  0x27   : > { %p3018_p10 = pneg %p3017_p9 }
  0x29   : > { %p3023_p12 = pnand %p3021_p11, %p3018_p10 }
  0x2b   : > { %3026 = shalt.err (!%p3023_p12)
}
  0x2c   : > { %s3027_s19 = scalar_lea.vmem %s382_s30, 64  ;;  %p3035_p5 = scmp.lt.s32.totalorder %s382_s30, %s382_s30 }
  0x2d   : > { %p3028_p13 = scmp.ne.s32.totalorder %s382_s30, %s3027_s19  ;;  %p3036_p4 = scmp.lt.s32.totalorder %s3027_s19, %s3027_s19 }
  0x2f   : > { %p3030_p0 = pnand %p3028_p13, %p3534_p8  ;;  %p3037_p1 = por %p3036_p4, %p3035_p5 }
  0x31   : > { %p3031_p2 = pneg %p3030_p0 }
  0x33   : > { %p3038_p3 = pnand %p3037_p1, %p3031_p2 }
  0x35   : > { %3041 = shalt.err (!%p3038_p3)
}
  0x36   : > { %2702 = dma.hbm_to_vmem [thread:$0]  (!%p3522_p6), %s4234_s3, 64, %s382_s30, [#allocation9]  }
  0x37   : > { %s4236_s5 = sld [smem:[#allocation35_spill]] }
  0x3d   : > { %s3042_s29 = scalar_lea.hbm %s4236_s5, 5120 }
  0x3e   : > { %p3043_p7 = scmp.ne.s32.totalorder %s4236_s5, %s3042_s29  ;;  %p3049_p1 = scmp.lt.u32.totalorder %s3042_s29, %s4236_s5 }
  0x40   : > { %p3045_p9 = pnand %p3043_p7, %p3534_p8 }
  0x42   : > { %p3046_p4 = pneg %p3045_p9 }
  0x44   : > { %p3051_p3 = pnand %p3049_p1, %p3046_p4 }
  0x46   : > { %3054 = shalt.err (!%p3051_p3)
}
  0x47   : > { %s3055_s30 = scalar_lea.vmem %s3518_s17, 5120  ;;  %p3063_p13 = scmp.lt.s32.totalorder %s3518_s17, %s3518_s17 }
  0x48   : > { %p3056_p10 = scmp.ne.s32.totalorder %s3518_s17, %s3055_s30  ;;  %p3064_p0 = scmp.lt.s32.totalorder %s3055_s30, %s3055_s30 }
  0x4a   : > { %p3058_p11 = pnand %p3056_p10, %p3534_p8  ;;  %p3065_p2 = por %p3064_p0, %p3063_p13 }
  0x4c   : > { %p3059_p12 = pneg %p3058_p11 }
  0x4e   : > { %p3066_p5 = pnand %p3065_p2, %p3059_p12 }
  0x50   : > { %3069 = shalt.err (!%p3066_p5)
}
  0x51   : > { %s4195_s13 = smov 320   ;;  %s4198_s12 = smov 20  }
  0x52   : > { %2708 = dma.hbm_to_vmem [thread:$0]  (!%p3522_p6), %s4236_s5, 5120, %s3518_s17, [#allocation12], %s4195_s13, %s4195_s13, %s4198_s12  }
  0x53   : > { %s4197_s21 = sadd.s32 4294967294, %s3386_s28   ;;  %s3578_s23 = sadd.s32 1, %s3386_s28  }
  0x54   : > { %4237 = sst [smem:[#allocation29_spill]] %s3578_s23  ;;  %s43_s29 = ssub.s32 %s3386_s28, %s3578_s23 }
  0x55   : > { %s46_s16 = sadd.s32 1, %s3382_s27  ;;  %p44_p7 = scmp.eq.s32.totalorder %s43_s29, 0 }
  0x56   : > { %p53_p9 = scmp.ne.s32.totalorder %s3382_s27, %s3378_s26  ;;  %p54_p4 = scmp.eq.s32.totalorder %s3386_s28, 0 }
  0x57   : > { %p59_p1 = scmp.ne.s32.totalorder %s3378_s26, %s3374_s25  ;;  %p4239_p10 = scmp.eq.s32.totalorder %s3506_s14, 0 }
  0x58   : > { %s3589_s19 = scalar_select %p44_p7, %s3382_s27, %s46_s16  }
  0x59   : > { %p55_p3 = por %p54_p4, %p53_p9  ;;  %p3593_p11 = por %p4239_p10, %p59_p1 }
  0x5a   : > { %4238 = sst [smem:[#allocation30_spill]] %s3589_s19  ;;  %p303_p12 = scmp.eq.s32.totalorder %s3506_s14, 1 }
  0x5b   : > { %s4240_s30 = scalar_select %p3593_p11, 1, 0 }
  0x5c   : > { %p309_p13 = scmp.eq.s32.totalorder %s4197_s21, 1  ;;  %p2740_p0 = scmp.lt.s32.totalorder %s3386_s28, 2 }
  0x5d   : > { %s4200_s17 = sand.u32 1, %s3382_s27   ;;  %p3602_p2 = por %p303_p12, %p53_p9 }
  0x5e   : > { %p3606_p5 = por %p309_p13, %p59_p1  ;;  %s3612_s29 = sshll.u32 %s4200_s17, 3 }
  0x5f   : > { %s4241_s20 = scalar_select %p3602_p2, 1, 0 }
  0x60   : > { %s4243_s22 = scalar_select %p3606_p5, 1, 0 }
  0x61   : > { %4242 = sst [smem:[#allocation31_spill]] %s4241_s20  ;;  %s3615_s16 = sshll.u32 %s3386_s28, 7 }
  0x62   : > { %4244 = sst [smem:[#allocation32_spill]] %s4243_s22  ;;  %p3617_p7 = pnand %p2740_p0, %p55_p3 }
  0x63   : > { %s469_s21 = sand.u32 1, %s3386_s28   ;;  %s4246_s1 = sld [smem:[#allocation33_spill]] }
  0x64   : > { %s4245_s13 = scalar_select %p3617_p7, 1, 0 }
  0x65   : > { %s473_s17 = scalar_lea.vmem [#allocation5], %s3612_s29  ;;  %s3392_s23 = smov [#allocation10]  }
  0x66   : > { %s480_s19 = sshll.u32 %s473_s17, 4  ;;  %s3631_s22 = sshll.u32 %s3392_s23, 4  ;;  %s3629_s19 = int_to_ptr.vmem [resolvable:$true] %s480_s19  ;;  %s393_s22 = int_to_ptr.vmem [resolvable:$true] %s3631_s22 }
  0x67   : > { %s3633_s25 = scalar_lea.sflag [#allocation6], %s469_s21  ;;  %p3639_p4 = pneg %p3617_p7 }
  0x69   : > { %s3626_s5 = scalar_lea.hbm %s4246_s1, %s3615_s16  ;;  %s3075_s28 = scalar_lea.hbm %s4246_s1, 256 }
  0x6a   : > { %s3070_s11 = scalar_lea.hbm %s3626_s5, 128  ;;  %p3076_p10 = scmp.lt.u32.totalorder %s3626_s5, %s4246_s1 }
  0x6b   : > { %p3071_p9 = scmp.ne.s32.totalorder %s3626_s5, %s3070_s11  ;;  %p3077_p12 = scmp.lt.u32.totalorder %s3075_s28, %s3070_s11 }
  0x6c   : > { %s4247_s3 = scalar_select %p3639_p4, 1, 0 }
  0x6d   : > { %p3073_p1 = pnand %p3639_p4, %p3071_p9  ;;  %p3078_p13 = por %p3077_p12, %p3076_p10 }
  0x6e   : > { %p3079_p0 = scmp.lt.u32.totalorder %s3070_s11, %s3626_s5 }
  0x6f   : > { %p3074_p3 = pneg %p3073_p1 }
  0x70   : > { %p3080_p5 = por %p3079_p0, %p3078_p13 }
  0x72   : > { %p3081_p2 = pnand %p3080_p5, %p3074_p3 }
  0x74   : > { %3084 = shalt.err (!%p3081_p2)
}
  0x75   : > { %s3085_s21 = scalar_lea.vmem %s3629_s19, 128  ;;  %s3393_s12 = smov [#allocation5]  }
  0x76   : > { %p3086_p9 = scmp.ne.s32.totalorder %s3629_s19, %s3085_s21  ;;  %s3090_s17 = sshll.u32 %s3393_s12, 4  ;;  %s3091_s17 = int_to_ptr.vmem [resolvable:$false] %s3090_s17 }
  0x77   : > { %s3092_s20 = scalar_lea.vmem %s3091_s17, 256  ;;  %p3093_p6 = scmp.lt.s32.totalorder %s3629_s19, %s3091_s17 }
  0x78   : > { %p3088_p1 = pnand %p3086_p9, %p3639_p4  ;;  %p3094_p8 = scmp.lt.s32.totalorder %s3092_s20, %s3085_s21 }
  0x7a   : > { %p3089_p11 = pneg %p3088_p1  ;;  %p3095_p10 = por %p3094_p8, %p3093_p6 }
  0x7c   : > { %p3096_p12 = pnand %p3095_p10, %p3089_p11 }
  0x7e   : > { %3099 = shalt.err (!%p3096_p12)
}
  0x7f   : > { %2721 = dma.hbm_to_vmem [thread:$0]  (!%p3617_p7), %s3626_s5, 128, %s3629_s19, %s3633_s25  }
  0x80   : > { %s3100_s23 = scalar_lea.hbm %s4181_s4, 64  ;;  %p4248_p6 = scmp.ne.s32.totalorder %s4235_s24, 0 }
  0x81   : > { %p3101_p2 = scmp.ne.s32.totalorder %s4181_s4, %s3100_s23  ;;  %p3107_p5 = scmp.lt.u32.totalorder %s3100_s23, %s4181_s4 }
  0x83   : > { %p3103_p8 = pnand %p3101_p2, %p4248_p6 }
  0x85   : > { %p3104_p11 = pneg %p3103_p8 }
  0x87   : > { %p3109_p3 = pnand %p3107_p5, %p3104_p11 }
  0x89   : > { %3112 = shalt.err (!%p3109_p3)
}
  0x8a   : > { %s3113_s20 = scalar_lea.vmem %s393_s22, 64  ;;  %p3121_p1 = scmp.lt.s32.totalorder %s393_s22, %s393_s22 }
  0x8b   : > { %p3114_p13 = scmp.ne.s32.totalorder %s393_s22, %s3113_s20  ;;  %p3122_p10 = scmp.lt.s32.totalorder %s3113_s20, %s3113_s20 }
  0x8d   : > { %p3116_p0 = pnand %p3114_p13, %p4248_p6  ;;  %p3123_p12 = por %p3122_p10, %p3121_p1 }
  0x8f   : > { %p3117_p9 = pneg %p3116_p0 }
  0x91   : > { %p3124_p7 = pnand %p3123_p12, %p3117_p9 }
  0x93   : > { %3127 = shalt.err (!%p3124_p7)
}
  0x94   : > { %p4249_p2 = scmp.ne.s32.totalorder %s4233_s18, 0  ;;  %s3394_s19 = smov [#allocation13]  }
  0x95   : > { %s418_s11 = sshll.u32 %s3394_s19, 4  ;;  %s3395_s28 = smov [#allocation14]   ;;  %s419_s11 = int_to_ptr.vmem [resolvable:$true] %s418_s11 }
  0x96   : > { %2705 = dma.hbm_to_vmem [thread:$0]  (!%p4249_p2), %s4181_s4, 64, %s393_s22, [#allocation9]  }
  0x97   : > { %s434_s23 = sshll.u32 %s3395_s28, 4  ;;  %s3128_s17 = scalar_lea.hbm %s4184_s7, 5120  ;;  %s435_s23 = int_to_ptr.vmem [resolvable:$true] %s434_s23 }
  0x98   : > { %p3129_p7 = scmp.ne.s32.totalorder %s4184_s7, %s3128_s17  ;;  %p3135_p5 = scmp.lt.u32.totalorder %s3128_s17, %s4184_s7 }
  0x9a   : > { %p3131_p8 = pnand %p3129_p7, %p4248_p6 }
  0x9c   : > { %p3132_p11 = pneg %p3131_p8 }
  0x9e   : > { %p3137_p3 = pnand %p3135_p5, %p3132_p11 }
  0xa0   : > { %3140 = shalt.err (!%p3137_p3)
}
  0xa1   : > { %s3141_s22 = scalar_lea.vmem %s419_s11, 5120  ;;  %p3149_p1 = scmp.lt.s32.totalorder %s419_s11, %s419_s11 }
  0xa2   : > { %p3142_p13 = scmp.ne.s32.totalorder %s419_s11, %s3141_s22  ;;  %p3150_p10 = scmp.lt.s32.totalorder %s3141_s22, %s3141_s22 }
  0xa4   : > { %p3144_p0 = pnand %p3142_p13, %p4248_p6  ;;  %p3151_p12 = por %p3150_p10, %p3149_p1 }
  0xa6   : > { %p3145_p9 = pneg %p3144_p0 }
  0xa8   : > { %p3152_p4 = pnand %p3151_p12, %p3145_p9 }
  0xaa   : > { %3155 = shalt.err (!%p3152_p4)
}
  0xab   : > { %s4250_s10 = smov 20   ;;  %s4251_s5 = smov 320  }
  0xac   : > { %2711 = dma.hbm_to_vmem [thread:$0]  (!%p4249_p2), %s4184_s7, 5120, %s419_s11, [#allocation12], %s4251_s5, %s4251_s5, %s4250_s10  }
  0xad   : > { %s3156_s21 = scalar_lea.hbm %s4186_s9, 5120 }
  0xae   : > { %p3157_p7 = scmp.ne.s32.totalorder %s4186_s9, %s3156_s21  ;;  %p3163_p11 = scmp.lt.u32.totalorder %s3156_s21, %s4186_s9 }
  0xb0   : > { %p3159_p4 = pnand %p3157_p7, %p4248_p6 }
  0xb2   : > { %p3160_p8 = pneg %p3159_p4 }
  0xb4   : > { %p3165_p5 = pnand %p3163_p11, %p3160_p8 }
  0xb6   : > { %3168 = shalt.err (!%p3165_p5)
}
  0xb7   : > { %s3169_s8 = scalar_lea.vmem %s435_s23, 5120  ;;  %p3177_p9 = scmp.lt.s32.totalorder %s435_s23, %s435_s23 }
  0xb8   : > { %p3170_p3 = scmp.ne.s32.totalorder %s435_s23, %s3169_s8  ;;  %p3178_p1 = scmp.lt.s32.totalorder %s3169_s8, %s3169_s8 }
  0xba   : > { %p3172_p13 = pnand %p3170_p3, %p4248_p6  ;;  %p3179_p10 = por %p3178_p1, %p3177_p9 }
  0xbc   : > { %p3173_p0 = pneg %p3172_p13 }
  0xbe   : > { %p3180_p12 = pnand %p3179_p10, %p3173_p0 }
  0xc0   : > { %3183 = shalt.err (!%p3180_p12)
}
  0xc1   : > { %2714 = dma.hbm_to_vmem [thread:$0]  (!%p4249_p2), %s4186_s9, 5120, %s435_s23, [#allocation15], %s4251_s5, %s4251_s5, %s4250_s10  }
  0xc2   : > { %s3728_s12 = scalar_lea.hbm %s4177_s0, %s3615_s16  ;;  %s455_s18 = scalar_lea.vmem [#allocation2], %s3612_s29 }
  0xc3   : > { %s462_s21 = sshll.u32 %s455_s18, 4  ;;  %s3737_s1 = scalar_lea.hbm %s4179_s2, %s3615_s16  ;;  %s3731_s21 = int_to_ptr.vmem [resolvable:$true] %s462_s21 }
  0xc4   : > { %s4252_s22 = sand.u32 1, %s3382_s27   ;;  %s3184_s10 = scalar_lea.hbm %s3728_s12, 128 }
  0xc5   : > { %s452_s23 = scalar_lea.sflag [#allocation3], %s4252_s22  ;;  %p3185_p6 = scmp.ne.s32.totalorder %s3728_s12, %s3184_s10 }
  0xc6   : > { %p4253_p2 = scmp.ne.s32.totalorder %s4247_s3, 0  ;;  %s3189_s11 = scalar_lea.hbm %s4177_s0, 256 }
  0xc7   : > { %p3190_p8 = scmp.lt.u32.totalorder %s3728_s12, %s4177_s0  ;;  %p3191_p11 = scmp.lt.u32.totalorder %s3189_s11, %s3184_s10 }
  0xc8   : > { %p3187_p7 = pnand %p3185_p6, %p4253_p2  ;;  %p3193_p3 = scmp.lt.u32.totalorder %s3184_s10, %s3728_s12 }
  0xc9   : > { %p3192_p5 = por %p3191_p11, %p3190_p8 }
  0xca   : > { %p3188_p4 = pneg %p3187_p7 }
  0xcb   : > { %p3194_p13 = por %p3193_p3, %p3192_p5 }
  0xcd   : > { %p3195_p0 = pnand %p3194_p13, %p3188_p4 }
  0xcf   : > { %3198 = shalt.err (!%p3195_p0)
}
  0xd0   : > { %s3199_s16 = scalar_lea.vmem %s3731_s21, 128  ;;  %s3396_s28 = smov [#allocation2]  }
  0xd1   : > { %p3200_p9 = scmp.ne.s32.totalorder %s3731_s21, %s3199_s16  ;;  %s3204_s18 = sshll.u32 %s3396_s28, 4  ;;  %s3205_s18 = int_to_ptr.vmem [resolvable:$false] %s3204_s18 }
  0xd2   : > { %s3206_s17 = scalar_lea.vmem %s3205_s18, 256  ;;  %p3207_p12 = scmp.lt.s32.totalorder %s3731_s21, %s3205_s18 }
  0xd3   : > { %p3202_p1 = pnand %p3200_p9, %p4253_p2  ;;  %p3208_p6 = scmp.lt.s32.totalorder %s3206_s17, %s3199_s16 }
  0xd5   : > { %p3203_p10 = pneg %p3202_p1  ;;  %p3209_p7 = por %p3208_p6, %p3207_p12 }
  0xd7   : > { %p3210_p8 = pnand %p3209_p7, %p3203_p10 }
  0xd9   : > { %3213 = shalt.err (!%p3210_p8)
}
  0xda   : > { %p4254_p4 = scmp.ne.s32.totalorder %s4245_s13, 0  ;;  %s491_s20 = scalar_lea.vmem [#allocation7], %s3612_s29 }
  0xdb   : > { %s498_s22 = sshll.u32 %s491_s20, 4  ;;  %s3214_s10 = scalar_lea.hbm %s3737_s1, 128  ;;  %s499_s22 = int_to_ptr.vmem [resolvable:$true] %s498_s22 }
  0xdc   : > { %2718 = dma.hbm_to_vmem [thread:$0]  (!%p4254_p4), %s3728_s12, 128, %s3731_s21, %s452_s23  }
  0xdd   : > { %p3215_p11 = scmp.ne.s32.totalorder %s3737_s1, %s3214_s10  ;;  %s3219_s11 = scalar_lea.hbm %s4179_s2, 256 }
  0xde   : > { %p3220_p13 = scmp.lt.u32.totalorder %s3737_s1, %s4179_s2  ;;  %p3221_p0 = scmp.lt.u32.totalorder %s3219_s11, %s3214_s10 }
  0xdf   : > { %p3217_p5 = pnand %p3215_p11, %p4253_p2  ;;  %p3223_p1 = scmp.lt.u32.totalorder %s3214_s10, %s3737_s1 }
  0xe0   : > { %p3222_p9 = por %p3221_p0, %p3220_p13 }
  0xe1   : > { %p3218_p3 = pneg %p3217_p5 }
  0xe2   : > { %p3224_p10 = por %p3223_p1, %p3222_p9 }
  0xe4   : > { %p3225_p12 = pnand %p3224_p10, %p3218_p3 }
  0xe6   : > { %3228 = shalt.err (!%p3225_p12)
}
  0xe7   : > { %s3229_s29 = scalar_lea.vmem %s499_s22, 128  ;;  %s3397_s12 = smov [#allocation7]  }
  0xe8   : > { %p3230_p6 = scmp.ne.s32.totalorder %s499_s22, %s3229_s29  ;;  %s3234_s21 = sshll.u32 %s3397_s12, 4  ;;  %s3235_s21 = int_to_ptr.vmem [resolvable:$false] %s3234_s21 }
  0xe9   : > { %s3236_s23 = scalar_lea.vmem %s3235_s21, 256  ;;  %p3237_p11 = scmp.lt.s32.totalorder %s499_s22, %s3235_s21 }
  0xea   : > { %p3232_p7 = pnand %p3230_p6, %p4253_p2  ;;  %p3238_p5 = scmp.lt.s32.totalorder %s3236_s23, %s3229_s29 }
  0xec   : > { %p3233_p8 = pneg %p3232_p7  ;;  %p3239_p4 = por %p3238_p5, %p3237_p11 }
  0xee   : > { %p3240_p0 = pnand %p3239_p4, %p3233_p8 }
  0xf0   : > { %3243 = shalt.err (!%p3240_p0)
}
  0xf1   : > { %p4255_p13 = scmp.ne.s32.totalorder %s4245_s13, 0  ;;  %p4256_p3 = scmp.ne.s32.totalorder %s4232_s15, 0 }
  0xf2   : > { %s3784_s3 = sand.u32 (!%p4256_p3), 1, %s3378_s26   ;;  %p4257_p2 = scmp.ne.s32.totalorder (!%p4256_p3), %s4240_s30, 0 }
  0xf3   : > { %2724 = dma.hbm_to_vmem [thread:$0]  (!%p4255_p13), %s3737_s1, 128, %s499_s22, %s3633_s25  }
  0xf4   : > { %507 = sbr.rel (%p4256_p3) target bundleno = 1460 (0x5b4), region = 64  ;;  %s3787_s16 = sshll.u32 (!%p4256_p3), %s3784_s3, 3 }
  0xf5   : > { %s510_s28 = scalar_lea.sflag (!%p4256_p3), [#allocation3], %s3784_s3  ;;  %s513_s18 = scalar_lea.vmem (!%p4256_p3), [#allocation2], %s3787_s16 }
  0xfb   : > { %3345 = dma.done.wait (%p4257_p2), %s510_s28, 128  }
  0xfc   : > { %3347 = vsyncadd (%p4257_p2), %s510_s28, 4294967168  ;;  %s518_s25 = sand.u32 1, %s3506_s14   ;;  %s522_s13 = scalar_lea.vmem [#allocation5], %s3787_s16 }
  0xfd   : > { %s519_s15 = scalar_lea.sflag [#allocation6], %s518_s25 }
  0xfe   : > { %3349 = dma.done.wait (%p4257_p2), %s519_s15, 256  }
  0xff   : > { %3351 = vsyncadd (%p4257_p2), %s519_s15, 4294967040  ;;  %s531_s1 = scalar_lea.vmem [#allocation7], %s3787_s16  ;;  %p4258_p4 = scmp.eq.s32.totalorder %s3506_s14, 0 }
 0x101   : > { %3353 = dma.done.wait (%p4258_p4), [#allocation9], 128   ;;  %p4259_p9 = pmov %p4258_p4 }
 0x102   : > { %p4260_p1 = pmov %p4258_p4 }
 0x103   : > { %3355 = vsyncadd (%p4259_p9), [#allocation9], 4294967168 }
 0x104   : > { %3357 = dma.done.wait (%p4260_p1), [#allocation12], 10240   ;;  %p4261_p10 = pmov %p4260_p1 }
 0x105   : > { %p4262_p12 = pmov %p4260_p1 }
 0x106   : > { %3359 = vsyncadd (%p4261_p10), [#allocation12], 4294957056 }
 0x107   : > { %3361 = dma.done.wait (%p4262_p12), [#allocation15], 5120   ;;  %p4263_p6 = pmov %p4260_p1 }
 0x108   : > { %v615_v0 = vld [vmem:[%s513_s18] sm:$0xff]  ;;  %v640_v1 = vld [vmem:[%s522_s13] sm:$0xff]  ;;  %v3398_v41 = vmov 0   ;;  %v3399_v45 = vmov 0.0   ;;  %vm3400_vm0 = vmmov 0   ;;  %vm1105_vm1 = vcmask 97280  }
 0x109   : > { %3363 = vsyncadd (%p4263_p6), [#allocation15], 4294962176  ;;  %618 = vadd.xlane.f32.xlu0 %v615_v0  ;;  %v2828_v2 = vld [vmem:[#allocation11 + $0x4] ss:$20 sps:$4 sm:$0xff]   ;;  %v2830_v3 = vld [vmem:[#allocation11 + $0xc] ss:$20 sps:$4 sm:$0xff]   ;;  %977 = vmatprep.mubr.bf16.mxu0 %v3398_v41 }
 0x10a   : > { %v2832_v4 = vld [vmem:[#allocation11] ss:$20 sps:$4 sm:$0xff]   ;;  %v2833_v5 = vld [vmem:[#allocation11 + $0x8] ss:$20 sps:$4 sm:$0xff]   ;;  %945 = vmatprep.subr.bf16.mxu0 %v2828_v2  ;;  %986 = vmatprep.subr.bf16.mxu1 %v2830_v3  ;;  %v2839_v9 = vld [vmem:[#allocation11 + $0x30] ss:$20 sps:$4 sm:$0xff]  }
 0x10b   : > { %v2834_v6 = vld [vmem:[#allocation11 + $0x2c] ss:$20 sps:$4 sm:$0xff]   ;;  %v2836_v7 = vld [vmem:[#allocation11 + $0x34] ss:$20 sps:$4 sm:$0xff]   ;;  %946 = vmatpush1.bf16.msra.mxu0 %v2832_v4  ;;  %987 = vmatpush1.bf16.msra.mxu1 %v2833_v5  ;;  %v2842_v11 = vld [vmem:[#allocation11 + $0x5c] ss:$20 sps:$4 sm:$0xff]  }
 0x10c   : > { %v2838_v8 = vld [vmem:[#allocation11 + $0x28] ss:$20 sps:$4 sm:$0xff]   ;;  %947 = vmatprep.subr.bf16.mxu0 %v2834_v6  ;;  %988 = vmatprep.subr.bf16.mxu1 %v2836_v7  ;;  %v2844_v12 = vld [vmem:[#allocation11 + $0x50] ss:$20 sps:$4 sm:$0xff]   ;;  %v2845_v13 = vld [vmem:[#allocation11 + $0x58] ss:$20 sps:$4 sm:$0xff]  }
 0x10d   : > { %643 = vadd.xlane.f32.xlu0 %v640_v1  ;;  %v2840_v10 = vld [vmem:[#allocation11 + $0x54] ss:$20 sps:$4 sm:$0xff]   ;;  %v2846_v23 = vld [vmem:[#allocation11 + $0x7c] ss:$20 sps:$4 sm:$0xff]   ;;  %v2848_v24 = vld [vmem:[#allocation11 + $0x84] ss:$20 sps:$4 sm:$0xff]   ;;  %1018 = vmatprep.mubr.bf16.mxu1 %v3398_v41 }
 0x10e   : > { %v664_v21 = vld [vmem:[%s531_s1] sm:$0xff]  ;;  %v2852_v27 = vld [vmem:[#allocation11 + $0xa4] ss:$20 sps:$4 sm:$0xff]   ;;  %2800 = vset.pattern.permute.xlu0 %v3398_v41  ;;  %v2444_v56 = vld [vmem:[#allocation10] ss:$0 sm:$0xff]  ;;  %s4264_s10 = sld [smem:[#allocation36_spill]] }
 0x10f   : > { %948 = vmatpush1.bf16.msra.mxu0 %v2838_v8  ;;  %989 = vmatpush1.bf16.msra.mxu1 %v2839_v9  ;;  %v2850_v25 = vld [vmem:[#allocation11 + $0x78] ss:$20 sps:$4 sm:$0xff]   ;;  %v2851_v26 = vld [vmem:[#allocation11 + $0x80] ss:$20 sps:$4 sm:$0xff]   ;;  %v2857_v30 = vld [vmem:[#allocation11 + $0xa8] ss:$20 sps:$4 sm:$0xff]  }
 0x110   : > { %949 = vmatprep.subr.bf16.mxu0 %v2840_v10  ;;  %990 = vmatprep.subr.bf16.mxu1 %v2842_v11  ;;  %v2854_v28 = vld [vmem:[#allocation11 + $0xac] ss:$20 sps:$4 sm:$0xff]   ;;  %v2860_v32 = vld [vmem:[#allocation11 + $0xd4] ss:$20 sps:$4 sm:$0xff]   ;;  %v2863_v34 = vld [vmem:[#allocation11 + $0xd0] ss:$20 sps:$4 sm:$0xff]  }
 0x111   : > { %v2856_v29 = vld [vmem:[#allocation11 + $0xa0] ss:$20 sps:$4 sm:$0xff]   ;;  %v2862_v33 = vld [vmem:[#allocation11 + $0xc8] ss:$20 sps:$4 sm:$0xff]   ;;  %v2868_v37 = vld [vmem:[#allocation11 + $0xf0] ss:$20 sps:$4 sm:$0xff]  }
 0x112   : > { %v2858_v31 = vld [vmem:[#allocation11 + $0xcc] ss:$20 sps:$4 sm:$0xff]   ;;  %v2864_v35 = vld [vmem:[#allocation11 + $0xf4] ss:$20 sps:$4 sm:$0xff]   ;;  %v2866_v36 = vld [vmem:[#allocation11 + $0xfc] ss:$20 sps:$4 sm:$0xff]  }
 0x113   : > { %950 = vmatpush1.bf16.msra.mxu0 %v2844_v12  ;;  %991 = vmatpush1.bf16.msra.mxu1 %v2845_v13  ;;  %v2869_v38 = vld [vmem:[#allocation11 + $0xf8] ss:$20 sps:$4 sm:$0xff]   ;;  %v2870_v39 = vld [vmem:[#allocation11 + $0x11c] ss:$20 sps:$4 sm:$0xff]   ;;  %v2875_v43 = vld [vmem:[#allocation11 + $0x120] ss:$20 sps:$4 sm:$0xff]  }
 0x114   : > { %951 = vmatprep.subr.bf16.mxu0 %v2846_v23  ;;  %992 = vmatprep.subr.bf16.mxu1 %v2848_v24  ;;  %v2872_v40 = vld [vmem:[#allocation11 + $0x124] ss:$20 sps:$4 sm:$0xff]   ;;  %v2876_v61 = vld [vmem:[#allocation13] ss:$20 sps:$4 sm:$0xff]   ;;  %v2880_v2 = vld [vmem:[#allocation13 + $0x28] ss:$20 sps:$4 sm:$0xff]  }
 0x115   : > { %v2874_v42 = vld [vmem:[#allocation11 + $0x118] ss:$20 sps:$4 sm:$0xff]   ;;  %v2879_v62 = vld [vmem:[#allocation11 + $0x10] ss:$20 sps:$4 sm:$0xff]   ;;  %v2886_v4 = vld [vmem:[#allocation13 + $0x54] ss:$20 sps:$4 sm:$0xff]  }
 0x116   : > { %v2878_v44 = vld [vmem:[#allocation13 + $0x4] ss:$20 sps:$4 sm:$0xff]   ;;  %v2887_v6 = vld [vmem:[#allocation11 + $0x60] ss:$20 sps:$4 sm:$0xff]   ;;  %v2890_v7 = vld [vmem:[#allocation13 + $0x7c] ss:$20 sps:$4 sm:$0xff]  }
 0x117   : > { %952 = vmatpush1.bf16.msra.mxu0 %v2850_v25  ;;  %993 = vmatpush1.bf16.msra.mxu1 %v2851_v26  ;;  %v2443_v54 = vld [vmem:[#allocation8] ss:$0 sm:$0xff]  ;;  %v2884_v5 = vld [vmem:[#allocation13 + $0x50] ss:$20 sps:$4 sm:$0xff]   ;;  %v2891_v9 = vld [vmem:[#allocation11 + $0x88] ss:$20 sps:$4 sm:$0xff]  }
 0x118   : > { %953 = vmatprep.subr.bf16.mxu0 %v2852_v27  ;;  %994 = vmatprep.subr.bf16.mxu1 %v2854_v28  ;;  %v2883_v3 = vld [vmem:[#allocation11 + $0x38] ss:$20 sps:$4 sm:$0xff]   ;;  %v2892_v11 = vld [vmem:[#allocation13 + $0xa0] ss:$20 sps:$4 sm:$0xff]   ;;  %v2895_v12 = vld [vmem:[#allocation11 + $0xb0] ss:$20 sps:$4 sm:$0xff]  }
 0x119   : > { %v2888_v8 = vld [vmem:[#allocation13 + $0x78] ss:$20 sps:$4 sm:$0xff]   ;;  %v2906_v23 = vld [vmem:[#allocation13 + $0x11c] ss:$20 sps:$4 sm:$0xff]   ;;  %vm1534_vm2 = vcmask 64512   ;;  %s4265_s11 = sld [smem:[#allocation37_spill]] }
 0x11a   : > { %v2894_v10 = vld [vmem:[#allocation13 + $0xa4] ss:$20 sps:$4 sm:$0xff]   ;;  %v2898_v13 = vld [vmem:[#allocation13 + $0xcc] ss:$20 sps:$4 sm:$0xff]   ;;  %v2446_v25 = vld [vmem:[#allocation10 + $0x1] ss:$0 sm:$0xff] }
 0x11b   : > { %954 = vmatpush1.bf16.msra.mxu0 %v2856_v29  ;;  %995 = vmatpush1.bf16.msra.mxu1 %v2857_v30  ;;  %v2904_v26 = vld [vmem:[#allocation13 + $0x118] ss:$20 sps:$4 sm:$0xff]   ;;  %v2907_v27 = vld [vmem:[#allocation11 + $0x128] ss:$20 sps:$4 sm:$0xff]   ;;  %v2911_v30 = vld [vmem:[#allocation13 + $0x10] ss:$20 sps:$4 sm:$0xff]  }
 0x11c   : > { %955 = vmatprep.subr.bf16.mxu0 %v2858_v31  ;;  %996 = vmatprep.subr.bf16.mxu1 %v2860_v32  ;;  %v2908_v29 = vld [vmem:[#allocation13 + $0x8] ss:$20 sps:$4 sm:$0xff]   ;;  %s4266_s28 = sld [smem:[#allocation31_spill]]  ;;  %s4039_s18 = sshll.u32 %s3506_s14, 7 }
 0x11d   : > { %v2914_v32 = vld [vmem:[#allocation13 + $0x34] ss:$20 sps:$4 sm:$0xff]   ;;  %s599_s15 = scalar_lea.vmem [#allocation16], %s3787_s16  ;;  %s4267_s17 = sld [smem:[#allocation38_spill]] }
 0x11e   : > { %s2169_s13 = sshll.u32 %s599_s15, 4  ;;  %s2146_s22 = scalar_lea.sflag [#allocation4], %s3784_s3  ;;  %s4049_s13 = int_to_ptr.vmem [resolvable:$true] %s2169_s13 }
 0x11f   : > { %956 = vmatpush1.bf16.msra.mxu0 %v2862_v33  ;;  %997 = vmatpush1.bf16.msra.mxu1 %v2863_v34  ;;  %v2912_v33 = vld [vmem:[#allocation13 + $0x30] ss:$20 sps:$4 sm:$0xff]   ;;  %v2915_v34 = vld [vmem:[#allocation13 + $0x38] ss:$20 sps:$4 sm:$0xff]   ;;  %s3244_s5 = scalar_lea.vmem %s4049_s13, 128  ;;  %s3412_s8 = smov [#allocation16]  }
 0x120   : > { %957 = vmatprep.subr.bf16.mxu0 %v2864_v35  ;;  %998 = vmatprep.subr.bf16.mxu1 %v2866_v36  ;;  %v2918_v35 = vld [vmem:[#allocation13 + $0x5c] ss:$20 sps:$4 sm:$0xff]   ;;  %v2916_v36 = vld [vmem:[#allocation13 + $0x58] ss:$20 sps:$4 sm:$0xff]   ;;  %p3245_p7 = scmp.ne.s32.totalorder %s4049_s13, %s3244_s5  ;;  %s3248_s19 = sshll.u32 %s3412_s8, 4  ;;  %s3249_s19 = int_to_ptr.vmem [resolvable:$false] %s3248_s19 }
 0x121   : > { %s3250_s24 = scalar_lea.vmem %s3249_s19, 256  ;;  %p3251_p0 = scmp.lt.s32.totalorder %s4049_s13, %s3249_s19 }
 0x122   : > { %p4268_p8 = scmp.ne.s32.totalorder %s4266_s28, 0  ;;  %p3252_p13 = scmp.lt.s32.totalorder %s3250_s24, %s3244_s5 }
 0x123   : > { %958 = vmatpush1.bf16.msra.mxu0 %v2868_v37  ;;  %999 = vmatpush1.bf16.msra.mxu1 %v2869_v38  ;;  %v2919_v37 = vld [vmem:[#allocation13 + $0x60] ss:$20 sps:$4 sm:$0xff]   ;;  %v2922_v38 = vld [vmem:[#allocation13 + $0x84] ss:$20 sps:$4 sm:$0xff]   ;;  %s4047_s20 = scalar_lea.hbm %s4267_s17, %s4039_s18 }
 0x124   : > { %959 = vmatprep.subr.bf16.mxu0 %v2870_v39  ;;  %1000 = vmatprep.subr.bf16.mxu1 %v2872_v40  ;;  %v2920_v39 = vld [vmem:[#allocation13 + $0x80] ss:$20 sps:$4 sm:$0xff]   ;;  %v2923_v40 = vld [vmem:[#allocation13 + $0x88] ss:$20 sps:$4 sm:$0xff]   ;;  %p3246_p11 = pnand %p3245_p7, %p4268_p8  ;;  %p3253_p3 = por %p3252_p13, %p3251_p0 }
 0x126   : > { %p3247_p5 = pneg %p3246_p11 }
 0x127   : > { %960 = vmatpush1.bf16.msra.mxu0 %v2874_v42  ;;  %1001 = vmatpush1.bf16.msra.mxu1 %v2875_v43  ;;  %v2926_v42 = vld [vmem:[#allocation13 + $0xac] ss:$20 sps:$4 sm:$0xff]   ;;  %v2924_v43 = vld [vmem:[#allocation13 + $0xa8] ss:$20 sps:$4 sm:$0xff]  }
 0x128   : > { %2607 = vmatprep.subr.bf16.mxu0 %v3399_v45  ;;  %1374 = vmatprep.subr.bf16.mxu1 %v2878_v44  ;;  %v2927_v44 = vld [vmem:[#allocation13 + $0xb0] ss:$20 sps:$4 sm:$0xff]   ;;  %p3254_p2 = pnand %p3253_p3, %p3247_p5 }
 0x196   : > { %v619_v14 = vpop.xlane.xlu0 %618 }
 0x197   : > { %v621_v15 = vmul.f32 0.0078125, %v619_v14 }
 0x199   : > { %v3816_v16 = vsub.f32 %v615_v0, %v621_v15  ;;  %v2882_v0 = vld [vmem:[#allocation13 + $0x2c] ss:$20 sps:$4 sm:$0xff]   ;;  %v2896_v15 = vld [vmem:[#allocation13 + $0xc8] ss:$20 sps:$4 sm:$0xff]  }
 0x19a   : > { %v644_v17 = vpop.xlane.xlu0 %643 }
 0x19b   : > { %v645_v18 = vmul.f32 0.0078125, %v644_v17  ;;  %v623_v19 = vmul.f32 %v3816_v16, %v3816_v16  ;;  %v2902_v17 = vld [vmem:[#allocation13 + $0xf4] ss:$20 sps:$4 sm:$0xff]  }
 0x19d   : > { %v3820_v20 = vsub.f32 %v640_v1, %v645_v18  ;;  %624 = vadd.xlane.f32.xlu1 %v623_v19  ;;  %v2445_v19 = vld [vmem:[#allocation8 + $0x1] ss:$0 sm:$0xff] }
 0x19f   : > { %v647_v22 = vmul.f32 %v3820_v20, %v3820_v20 }
 0x1a1   : > { %667 = vadd.xlane.f32.xlu1 %v664_v21  ;;  %648 = vadd.xlane.f32.xlu0 %v647_v22  ;;  %v2903_v22 = vld [vmem:[#allocation11 + $0x100] ss:$20 sps:$4 sm:$0xff]  }
 0x22a   : > { %v625_v46 = vpop.xlane.xlu1 %624 }
 0x22b   : > { %v626_v47 = vmul.f32 0.0078125, %v625_v46  ;;  %v2930_v46 = vld [vmem:[#allocation13 + $0xd4] ss:$20 sps:$4 sm:$0xff]  }
 0x22d   : > { %v627_v48 = vadd.f32 1e-05, %v626_v47  ;;  %v2928_v47 = vld [vmem:[#allocation13 + $0xd0] ss:$20 sps:$4 sm:$0xff]  }
 0x22e   : > { %v668_v49 = vpop.xlane.xlu1 %667  ;;  %v649_v57 = vpop.xlane.xlu0 %648 }
 0x22f   : > { %2996 = vrsqrt.f32 %v627_v48  ;;  %v669_v50 = vmul.f32 0.0078125, %v668_v49  ;;  %v650_v60 = vmul.f32 0.0078125, %v649_v57  ;;  %v2931_v48 = vld [vmem:[#allocation13 + $0xd8] ss:$20 sps:$4 sm:$0xff]   ;;  %v2934_v49 = vld [vmem:[#allocation13 + $0xfc] ss:$20 sps:$4 sm:$0xff]  }
 0x230   : > { %v2945_v57 = vld [vmem:[#allocation14 + $0xc] ss:$20 sps:$4 sm:$0xff]  }
 0x231   : > { %v3830_v51 = vsub.f32 %v664_v21, %v669_v50  ;;  %v651_v1 = vadd.f32 1e-05, %v650_v60  ;;  %v2900_v21 = vld [vmem:[#allocation13 + $0xf0] ss:$20 sps:$4 sm:$0xff]   ;;  %v2932_v50 = vld [vmem:[#allocation13 + $0xf8] ss:$20 sps:$4 sm:$0xff]  }
 0x232   : > { %v2948_v60 = vld [vmem:[#allocation14 + $0x2c] ss:$20 sps:$4 sm:$0xff]  }
 0x233   : > { %v671_v52 = vmul.f32 %v3830_v51, %v3830_v51  ;;  %2998 = vrsqrt.f32 %v651_v1  ;;  %v2957_v1 = vld [vmem:[#allocation14 + $0x5c] ss:$20 sps:$4 sm:$0xff]  }
 0x235   : > { %672 = vadd.xlane.f32.xlu1 %v671_v52  ;;  %v2935_v52 = vld [vmem:[#allocation13 + $0x100] ss:$20 sps:$4 sm:$0xff]  }
 0x239   : > { %v2997_v53 = vpop.eup %2996 }
 0x23a   : > { %v629_v55 = vmul.f32 %v2997_v53, %v3816_v16  ;;  %v2899_v16 = vld [vmem:[#allocation11 + $0xd8] ss:$20 sps:$4 sm:$0xff]  }
 0x23b   : > { %v2938_v53 = vld [vmem:[#allocation13 + $0x124] ss:$20 sps:$4 sm:$0xff]  }
 0x23c   : > { %v634_v58 = vmul.f32 %v2443_v54, %v629_v55  ;;  %v2936_v54 = vld [vmem:[#allocation13 + $0x120] ss:$20 sps:$4 sm:$0xff]   ;;  %v2939_v55 = vld [vmem:[#allocation13 + $0x128] ss:$20 sps:$4 sm:$0xff]  }
 0x23d   : > { %v2999_v14 = vpop.eup %2998 }
 0x23e   : > { %v639_v59 = vadd.f32 %v2444_v56, %v634_v58  ;;  %v653_v18 = vmul.f32 %v2999_v14, %v3820_v20  ;;  %v2910_v20 = vld [vmem:[#allocation13 + $0xc] ss:$20 sps:$4 sm:$0xff]   ;;  %v2942_v56 = vld [vmem:[#allocation14 + $0x4] ss:$20 sps:$4 sm:$0xff]   ;;  %v2970_v14 = vld [vmem:[#allocation14 + $0xc8] ss:$20 sps:$4 sm:$0xff]  }
 0x23f   : > { %v2940_v58 = vld [vmem:[#allocation14] ss:$20 sps:$4 sm:$0xff]  }
 0x240   : > { %v3835_v63 = vpack.c.bf16 %v639_v59, %v639_v59  ;;  %v658_v24 = vmul.f32 %v2445_v19, %v653_v18  ;;  %v2943_v59 = vld [vmem:[#allocation14 + $0x8] ss:$20 sps:$4 sm:$0xff]   ;;  %v2976_v18 = vld [vmem:[#allocation14 + $0xf0] ss:$20 sps:$4 sm:$0xff]   ;;  %v2979_v19 = vld [vmem:[#allocation14 + $0xf8] ss:$20 sps:$4 sm:$0xff]  }
 0x242   : > { %978 = vmatmul.mubr.bf16.vlgmr.msra.gmra.mrb[0].mxu0 %v3835_v63  ;;  %1019 = vmatmul.mubr.bf16.vlgmr.msra.gmra.mrb[0].mxu1 %v3835_v63  ;;  %v663_v28 = vadd.f32 %v2446_v25, %v658_v24  ;;  %v2985_v24 = vld [vmem:[#allocation14 + $0x120] ss:$20 sps:$4 sm:$0xff]  }
 0x243   : > { %2608 = vmatpush3.bf16.msra.mxu0 %v2879_v62  ;;  %1375 = vmatpush1.bf16.msra.mxu1 %v2876_v61  ;;  %v2951_v61 = vld [vmem:[#allocation14 + $0x34] ss:$20 sps:$4 sm:$0xff]  }
 0x244   : > { %2609 = vmatprep.subr.bf16.mxu0 %v3399_v45  ;;  %1376 = vmatprep.subr.bf16.mxu1 %v2882_v0  ;;  %v3850_v31 = vpack.c.bf16 %v663_v28, %v663_v28  ;;  %v2946_v62 = vld [vmem:[#allocation14 + $0x28] ss:$20 sps:$4 sm:$0xff]  }
 0x245   : > { %2623 = vmatprep.mubr.msk.bf16.mxu0 %vm3400_vm0, %v3399_v45  ;;  %1406 = vmatprep.mubr.bf16.mxu1 %v3398_v41  ;;  %v2954_v0 = vld [vmem:[#allocation14 + $0x54] ss:$20 sps:$4 sm:$0xff]  }
 0x247   : > { %2610 = vmatpush3.bf16.msra.mxu0 %v2883_v3  ;;  %1377 = vmatpush1.bf16.msra.mxu1 %v2880_v2  ;;  %v2952_v2 = vld [vmem:[#allocation14 + $0x50] ss:$20 sps:$4 sm:$0xff]   ;;  %v2955_v3 = vld [vmem:[#allocation14 + $0x58] ss:$20 sps:$4 sm:$0xff]  }
 0x248   : > { %2611 = vmatprep.subr.bf16.mxu0 %v3399_v45  ;;  %1378 = vmatprep.subr.bf16.mxu1 %v2886_v4  ;;  %v2960_v4 = vld [vmem:[#allocation14 + $0x7c] ss:$20 sps:$4 sm:$0xff]  }
 0x24b   : > { %2612 = vmatpush3.bf16.msra.mxu0 %v2887_v6  ;;  %1379 = vmatpush1.bf16.msra.mxu1 %v2884_v5  ;;  %v2963_v5 = vld [vmem:[#allocation14 + $0x84] ss:$20 sps:$4 sm:$0xff]  }
 0x24c   : > { %2613 = vmatprep.subr.bf16.mxu0 %v3399_v45  ;;  %1380 = vmatprep.subr.bf16.mxu1 %v2890_v7  ;;  %v2958_v6 = vld [vmem:[#allocation14 + $0x78] ss:$20 sps:$4 sm:$0xff]   ;;  %v2961_v7 = vld [vmem:[#allocation14 + $0x80] ss:$20 sps:$4 sm:$0xff]  }
 0x24f   : > { %2614 = vmatpush3.bf16.msra.mxu0 %v2891_v9  ;;  %1381 = vmatpush1.bf16.msra.mxu1 %v2888_v8  ;;  %v2966_v8 = vld [vmem:[#allocation14 + $0xa4] ss:$20 sps:$4 sm:$0xff]   ;;  %v2969_v9 = vld [vmem:[#allocation14 + $0xac] ss:$20 sps:$4 sm:$0xff]  }
 0x250   : > { %2615 = vmatprep.subr.bf16.mxu0 %v3399_v45  ;;  %1382 = vmatprep.subr.bf16.mxu1 %v2894_v10  ;;  %v2964_v10 = vld [vmem:[#allocation14 + $0xa0] ss:$20 sps:$4 sm:$0xff]  }
 0x253   : > { %2616 = vmatpush3.bf16.msra.mxu0 %v2895_v12  ;;  %1383 = vmatpush1.bf16.msra.mxu1 %v2892_v11  ;;  %v2967_v11 = vld [vmem:[#allocation14 + $0xa8] ss:$20 sps:$4 sm:$0xff]   ;;  %v2972_v12 = vld [vmem:[#allocation14 + $0xcc] ss:$20 sps:$4 sm:$0xff]  }
 0x254   : > { %2617 = vmatprep.subr.bf16.mxu0 %v3399_v45  ;;  %1384 = vmatprep.subr.bf16.mxu1 %v2898_v13  ;;  %v2975_v13 = vld [vmem:[#allocation14 + $0xd4] ss:$20 sps:$4 sm:$0xff]  }
 0x257   : > { %2618 = vmatpush3.bf16.msra.mxu0 %v2899_v16  ;;  %1385 = vmatpush1.bf16.msra.mxu1 %v2896_v15  ;;  %v2973_v15 = vld [vmem:[#allocation14 + $0xd0] ss:$20 sps:$4 sm:$0xff]   ;;  %v2978_v16 = vld [vmem:[#allocation14 + $0xf4] ss:$20 sps:$4 sm:$0xff]  }
 0x258   : > { %2619 = vmatprep.subr.bf16.mxu0 %v3399_v45  ;;  %1386 = vmatprep.subr.bf16.mxu1 %v2902_v17  ;;  %v2981_v17 = vld [vmem:[#allocation14 + $0xfc] ss:$20 sps:$4 sm:$0xff]  }
 0x25b   : > { %2620 = vmatpush3.bf16.msra.mxu0 %v2903_v22  ;;  %1387 = vmatpush1.bf16.msra.mxu1 %v2900_v21  ;;  %v2984_v21 = vld [vmem:[#allocation14 + $0x11c] ss:$20 sps:$4 sm:$0xff]   ;;  %v2987_v22 = vld [vmem:[#allocation14 + $0x124] ss:$20 sps:$4 sm:$0xff]  }
 0x25c   : > { %2621 = vmatprep.subr.bf16.mxu0 %v3399_v45  ;;  %1388 = vmatprep.subr.bf16.mxu1 %v2906_v23  ;;  %v2982_v23 = vld [vmem:[#allocation14 + $0x118] ss:$20 sps:$4 sm:$0xff]  }
 0x25f   : > { %2622 = vmatpush3.bf16.msra.mxu0 %v2907_v27  ;;  %1389 = vmatpush1.bf16.msra.mxu1 %v2904_v26 }
 0x260   : > { %1415 = vmatprep.subr.bf16.mxu0 %v2910_v20  ;;  %2627 = vmatprep.subr.bf16.mxu1 %v3399_v45  ;;  %v2447_v20 = vld [vmem:[#allocation8 + $0x2] ss:$0 sm:$0xff] }
 0x262   : > { %2624 = vmatmul.mubr.bf16.vlgmr.msra.gmra.mrb[4].mxu0 %v3835_v63  ;;  %1407 = vmatmul.mubr.bf16.vlgmr.msra.gmra.mrb[4].mxu1 %v3850_v31  ;;  %v2949_v63 = vld [vmem:[#allocation14 + $0x30] ss:$20 sps:$4 sm:$0xff]  }
 0x263   : > { %1416 = vmatpush1.bf16.msra.mxu0 %v2908_v29  ;;  %2628 = vmatpush3.bf16.msra.mxu1 %v2911_v30  ;;  %v2448_v30 = vld [vmem:[#allocation10 + $0x2] ss:$0 sm:$0xff] }
 0x264   : > { %1417 = vmatprep.subr.bf16.mxu0 %v2914_v32  ;;  %2629 = vmatprep.subr.bf16.mxu1 %v3399_v45 }
 0x265   : > { %1447 = vmatprep.mubr.bf16.mxu0 %v3398_v41  ;;  %2643 = vmatprep.mubr.msk.bf16.mxu1 %vm3400_vm0, %v3399_v45 }
 0x267   : > { %1418 = vmatpush1.bf16.msra.mxu0 %v2912_v33  ;;  %2630 = vmatpush3.bf16.msra.mxu1 %v2915_v34  ;;  %v2988_v33 = vld [vmem:[#allocation14 + $0x10] ss:$20 sps:$4 sm:$0xff]  }
 0x268   : > { %1419 = vmatprep.subr.bf16.mxu0 %v2918_v35  ;;  %2631 = vmatprep.subr.bf16.mxu1 %v3399_v45  ;;  %v2989_v35 = vld [vmem:[#allocation14 + $0x38] ss:$20 sps:$4 sm:$0xff]  }
 0x26b   : > { %1420 = vmatpush1.bf16.msra.mxu0 %v2916_v36  ;;  %2632 = vmatpush3.bf16.msra.mxu1 %v2919_v37  ;;  %v2990_v36 = vld [vmem:[#allocation14 + $0x60] ss:$20 sps:$4 sm:$0xff]   ;;  %v2992_v37 = vld [vmem:[#allocation14 + $0xb0] ss:$20 sps:$4 sm:$0xff]  }
 0x26c   : > { %1421 = vmatprep.subr.bf16.mxu0 %v2922_v38  ;;  %2633 = vmatprep.subr.bf16.mxu1 %v3399_v45  ;;  %v2993_v38 = vld [vmem:[#allocation14 + $0xd8] ss:$20 sps:$4 sm:$0xff]  }
 0x26f   : > { %1422 = vmatpush1.bf16.msra.mxu0 %v2920_v39  ;;  %2634 = vmatpush3.bf16.msra.mxu1 %v2923_v40  ;;  %v2994_v39 = vld [vmem:[#allocation14 + $0x100] ss:$20 sps:$4 sm:$0xff]   ;;  %v2995_v40 = vld [vmem:[#allocation14 + $0x128] ss:$20 sps:$4 sm:$0xff]  }
 0x270   : > { %1423 = vmatprep.subr.bf16.mxu0 %v2926_v42  ;;  %2635 = vmatprep.subr.bf16.mxu1 %v3399_v45 }
 0x273   : > { %1424 = vmatpush1.bf16.msra.mxu0 %v2924_v43  ;;  %2636 = vmatpush3.bf16.msra.mxu1 %v2927_v44 }
 0x274   : > { %1425 = vmatprep.subr.bf16.mxu0 %v2930_v46  ;;  %2637 = vmatprep.subr.bf16.mxu1 %v3399_v45 }
 0x277   : > { %1426 = vmatpush1.bf16.msra.mxu0 %v2928_v47  ;;  %2638 = vmatpush3.bf16.msra.mxu1 %v2931_v48 }
 0x278   : > { %1427 = vmatprep.subr.bf16.mxu0 %v2934_v49  ;;  %2639 = vmatprep.subr.bf16.mxu1 %v3399_v45 }
 0x27b   : > { %1428 = vmatpush1.bf16.msra.mxu0 %v2932_v50  ;;  %2640 = vmatpush3.bf16.msra.mxu1 %v2935_v52  ;;  %v2489_v52 = vld [vmem:[%s4183_s6 + $0x4] ss:$0 sm:$0xff] }
 0x27c   : > { %1429 = vmatprep.subr.bf16.mxu0 %v2938_v53  ;;  %2641 = vmatprep.subr.bf16.mxu1 %v3399_v45 }
 0x27f   : > { %1430 = vmatpush1.bf16.msra.mxu0 %v2936_v54  ;;  %2642 = vmatpush3.bf16.msra.mxu1 %v2939_v55 }
 0x280   : > { %1803 = vmatprep.subr.bf16.mxu0 %v2942_v56  ;;  %1844 = vmatprep.subr.bf16.mxu1 %v2945_v57 }
 0x282   : > { %1448 = vmatmul.mubr.bf16.vlgmr.msra.gmra.mrb[8].mxu0 %v3850_v31  ;;  %2644 = vmatmul.mubr.bf16.vlgmr.msra.gmra.mrb[8].mxu1 %v3850_v31 }
 0x283   : > { %1804 = vmatpush1.bf16.msra.mxu0 %v2940_v58  ;;  %1845 = vmatpush1.bf16.msra.mxu1 %v2943_v59 }
 0x284   : > { %1805 = vmatprep.subr.bf16.mxu0 %v2948_v60  ;;  %1846 = vmatprep.subr.bf16.mxu1 %v2951_v61 }
 0x285   : > { %1835 = vmatprep.mubr.bf16.mxu0 %v3398_v41  ;;  %1876 = vmatprep.mubr.bf16.mxu1 %v3398_v41 }
 0x287   : > { %1806 = vmatpush1.bf16.msra.mxu0 %v2946_v62  ;;  %1847 = vmatpush1.bf16.msra.mxu1 %v2949_v63  ;;  %v2530_v62 = vld [vmem:[%s4264_s10 + $0x4] ss:$0 sm:$0xff] }
 0x288   : > { %1807 = vmatprep.subr.bf16.mxu0 %v2954_v0  ;;  %1848 = vmatprep.subr.bf16.mxu1 %v2957_v1 }
 0x28b   : > { %1808 = vmatpush1.bf16.msra.mxu0 %v2952_v2  ;;  %1849 = vmatpush1.bf16.msra.mxu1 %v2955_v3 }
 0x28c   : > { %1809 = vmatprep.subr.bf16.mxu0 %v2960_v4  ;;  %1850 = vmatprep.subr.bf16.mxu1 %v2963_v5 }
 0x28f   : > { %1810 = vmatpush1.bf16.msra.mxu0 %v2958_v6  ;;  %1851 = vmatpush1.bf16.msra.mxu1 %v2961_v7 }
 0x290   : > { %1811 = vmatprep.subr.bf16.mxu0 %v2966_v8  ;;  %1852 = vmatprep.subr.bf16.mxu1 %v2969_v9 }
 0x293   : > { %1812 = vmatpush1.bf16.msra.mxu0 %v2964_v10  ;;  %1853 = vmatpush1.bf16.msra.mxu1 %v2967_v11 }
 0x294   : > { %1813 = vmatprep.subr.bf16.mxu0 %v2972_v12  ;;  %1854 = vmatprep.subr.bf16.mxu1 %v2975_v13 }
 0x297   : > { %1814 = vmatpush1.bf16.msra.mxu0 %v2970_v14  ;;  %1855 = vmatpush1.bf16.msra.mxu1 %v2973_v15 }
 0x298   : > { %1815 = vmatprep.subr.bf16.mxu0 %v2978_v16  ;;  %1856 = vmatprep.subr.bf16.mxu1 %v2981_v17 }
 0x29b   : > { %1816 = vmatpush1.bf16.msra.mxu0 %v2976_v18  ;;  %1857 = vmatpush1.bf16.msra.mxu1 %v2979_v19 }
 0x29c   : > { %1817 = vmatprep.subr.bf16.mxu0 %v2984_v21  ;;  %1858 = vmatprep.subr.bf16.mxu1 %v2987_v22  ;;  %v2571_v21 = vld [vmem:[%s4265_s11 + $0x4] ss:$0 sm:$0xff] }
 0x29f   : > { %1818 = vmatpush1.bf16.msra.mxu0 %v2982_v23  ;;  %1859 = vmatpush1.bf16.msra.mxu1 %v2985_v24 }
 0x2a0   : > { %2647 = vmatprep.subr.bf16.mxu0 %v3399_v45 }
 0x2c2   : > { %v673_v25 = vpop.xlane.xlu1 %672 }
 0x2c3   : > { %v674_v26 = vmul.f32 0.0078125, %v673_v25 }
 0x2c5   : > { %v675_v27 = vadd.f32 1e-05, %v674_v26 }
 0x2c7   : > { %3000 = vrsqrt.f32 %v675_v27 }
 0x2d1   : > { %v3001_v28 = vpop.eup %3000 }
 0x2d2   : > { %v677_v29 = vmul.f32 %v3001_v28, %v3830_v51  ;;  %v2991_v51 = vld [vmem:[#allocation14 + $0x88] ss:$20 sps:$4 sm:$0xff]  }
 0x2d4   : > { %v682_v31 = vmul.f32 %v2447_v20, %v677_v29 }
 0x2d6   : > { %v687_v32 = vadd.f32 %v2448_v30, %v682_v31 }
 0x2d8   : > { %v1546_v34 = vpack.c.bf16 %v687_v32, %v687_v32 }
 0x2da   : > { %1836 = vmatmul.mubr.bf16.vlgmr.msra.gmra.mrb[12].mxu0 %v1546_v34  ;;  %1877 = vmatmul.mubr.bf16.vlgmr.msra.gmra.mrb[12].mxu1 %v1546_v34 }
 0x2db   : > { %2648 = vmatpush3.bf16.msra.mxu0 %v2988_v33  ;;  %2663 = vmatprep.mubr.msk.bf16.mxu0 %vm3400_vm0, %v3399_v45 }
 0x2dc   : > { %2649 = vmatprep.subr.bf16.mxu0 %v3399_v45 }
 0x2df   : > { %2650 = vmatpush3.bf16.msra.mxu0 %v2989_v35 }
 0x2e0   : > { %2651 = vmatprep.subr.bf16.mxu0 %v3399_v45 }
 0x2e3   : > { %2652 = vmatpush3.bf16.msra.mxu0 %v2990_v36 }
 0x2e4   : > { %2653 = vmatprep.subr.bf16.mxu0 %v3399_v45 }
 0x2e7   : > { %2654 = vmatpush3.bf16.msra.mxu0 %v2991_v51 }
 0x2e8   : > { %2655 = vmatprep.subr.bf16.mxu0 %v3399_v45 }
 0x2eb   : > { %2656 = vmatpush3.bf16.msra.mxu0 %v2992_v37 }
 0x2ec   : > { %2657 = vmatprep.subr.bf16.mxu0 %v3399_v45 }
 0x2ef   : > { %2658 = vmatpush3.bf16.msra.mxu0 %v2993_v38 }
 0x2f0   : > { %2659 = vmatprep.subr.bf16.mxu0 %v3399_v45 }
 0x2f3   : > { %2660 = vmatpush3.bf16.msra.mxu0 %v2994_v39 }
 0x2f4   : > { %2661 = vmatprep.subr.bf16.mxu0 %v3399_v45 }
 0x2f7   : > { %2662 = vmatpush3.bf16.msra.mxu0 %v2995_v40 }
 0x2fa   : > { %2664 = vmatmul.mubr.bf16.vlgmr.msra.gmra.mrb[16].mxu0 %v1546_v34  ;;  %v3401_v34 = vmov 1  }
 0x2fb   : > { %2801 = vset.pattern.permute.xlu1 %v3401_v34 }
 0x315   : > { %v3880_v42 = vpop.f32.mrb[0].mxu0  ;;  %v3882_v43 = vpop.f32.mrb[0].mxu1 }
 0x316   : > { %v3884_v44 = vpop.f32.mrb[1].mxu0  ;;  %v3886_v46 = vpop.f32.mrb[1].mxu1 }
 0x317   : > { %v983_v47 = vpop.f32.mrb[2].mxu0  ;;  %v1024_v48 = vpop.f32.mrb[2].mxu1 }
 0x318   : > { %v984_v49 = vpop.f32.mrb[3].mxu0  ;;  %v1025_v50 = vpop.f32.mrb[3].mxu1  ;;  %v3402_v48 = vmov 9  }
 0x319   : > { %v3403_v49 = vmov 10   ;;  %v3404_v50 = vmov 2  }
 0x335   : > { %v1061_v53 = vpop.f32.mrb[4].mxu0  ;;  %v3891_v45 = vpop.f32.mrb[4].mxu1 }
 0x336   : > { %v1104_v54 = vadd.f32 %v2489_v52, %v1061_v53  ;;  %v2625_v55 = vpop.f32.mrb[5].mxu0  ;;  %v3893_v56 = vpop.f32.mrb[5].mxu1  ;;  %v3405_v53 = vmov 3  }
 0x337   : > { %v1064_v57 = vpop.f32.mrb[6].mxu0  ;;  %v1412_v58 = vpop.f32.mrb[6].mxu1 }
 0x338   : > { %v2626_v59 = vpop.f32.mrb[7].mxu0  ;;  %v1413_v60 = vpop.f32.mrb[7].mxu1  ;;  %v1106_v61 = vsel %vm1105_vm1, %v1104_v54, -inf  ;;  %v3407_v58 = vmov 5  }
 0x339   : > { %1107 = vmax.xlane.f32.xlu0 %v1106_v61  ;;  %v3408_v59 = vmov 6   ;;  %v3409_v60 = vmov 7   ;;  %v3410_v61 = vmov 8  }
 0x355   : > { %v3899_v63 = vpop.f32.mrb[8].mxu0  ;;  %v1490_v0 = vpop.f32.mrb[8].mxu1 }
 0x356   : > { %v1533_v1 = vadd.f32 %v2530_v62, %v1490_v0  ;;  %v3901_v2 = vpop.f32.mrb[9].mxu0  ;;  %v2645_v3 = vpop.f32.mrb[9].mxu1  ;;  %v3411_v62 = vmov 11   ;;  %v1069_v0 = vlaneseq }
 0x357   : > { %v1453_v4 = vpop.f32.mrb[10].mxu0  ;;  %v1493_v5 = vpop.f32.mrb[10].mxu1  ;;  %v1496_v3 = vld [vmem:[%s4264_s10] sm:$0xf] }
 0x358   : > { %v1454_v6 = vpop.f32.mrb[11].mxu0  ;;  %v2646_v7 = vpop.f32.mrb[11].mxu1  ;;  %v1535_v8 = vsel %vm1534_vm2, %v1533_v1, -inf }
 0x359   : > { %1536 = vmax.xlane.f32.xlu1 %v1535_v8 }
 0x3ad   : > { %v3904_v9 = vpop.f32.mrb[12].mxu0  ;;  %v3906_v10 = vpop.f32.mrb[12].mxu1 }
 0x3ae   : > { %v3908_v11 = vpop.f32.mrb[13].mxu0  ;;  %v3910_v12 = vpop.f32.mrb[13].mxu1 }
 0x3af   : > { %v1841_v13 = vpop.f32.mrb[14].mxu0  ;;  %v1882_v14 = vpop.f32.mrb[14].mxu1 }
 0x3b0   : > { %v1842_v15 = vpop.f32.mrb[15].mxu0  ;;  %v1883_v16 = vpop.f32.mrb[15].mxu1 }
 0x3c6   : > { %v1108_v17 = vpop.xlane.xlu0 %1107 }
 0x3c7   : > { %v1109_v18 = vsub.f32 %v1104_v54, %v1108_v17  ;;  %v3406_v54 = vmov 4  }
 0x3c9   : > { %v1110_v19 = vmul.f32 1.442695, %v1109_v18 }
 0x3cb   : > { %3002 = vpow2.f32 %v1110_v19 }
 0x3cd   : > { %v1919_v22 = vpop.f32.mrb[16].mxu0 }
 0x3ce   : > { %v1962_v23 = vadd.f32 %v2571_v21, %v1919_v22  ;;  %v2665_v24 = vpop.f32.mrb[17].mxu0 }
 0x3cf   : > { %v1922_v25 = vpop.f32.mrb[18].mxu0 }
 0x3d0   : > { %v2666_v26 = vpop.f32.mrb[19].mxu0  ;;  %v1963_v27 = vsel %vm1534_vm2, %v1962_v23, -inf }
 0x3d1   : > { %1964 = vmax.xlane.f32.xlu0 %v1963_v27 }
 0x3d5   : > { %v3003_v28 = vpop.eup %3002 }
 0x3d6   : > { %v1112_v20 = vsel %vm1105_vm1, %v3003_v28, 0.0 }
 0x3d7   : > { %1113 = vadd.xlane.f32.xlu1 %v1112_v20 }
 0x3e6   : > { %v1537_v29 = vpop.xlane.xlu1 %1536 }
 0x3e7   : > { %v1538_v30 = vsub.f32 %v1533_v1, %v1537_v29  ;;  %v1070_v1 = vshrl.u32 %v1069_v0, 7 }
 0x3e9   : > { %v1539_v31 = vmul.f32 1.442695, %v1538_v30  ;;  %v3939_v4 = vsub.s32 0, %v1070_v1  ;;  %v3941_v5 = vsub.s32 1, %v1070_v1  ;;  %v3951_v14 = vsub.s32 2, %v1070_v1 }
 0x3ea   : > { %v3953_v15 = vsub.s32 3, %v1070_v1 }
 0x3eb   : > { %3004 = vpow2.f32 %v1539_v31  ;;  %v1501_v6 = vrot.slane %v1496_v3, %v3939_v4  ;;  %v1505_v7 = vrot.slane %v1496_v3, %v3941_v5  ;;  %v1509_v19 = vrot.slane %v1496_v3, %v3951_v14 }
 0x3ec   : > { %v1513_v21 = vrot.slane %v1496_v3, %v3953_v15 }
 0x3ed   : > { %v3946_v8 = vadd.f32 %v1501_v6, %v3891_v45  ;;  %v3949_v13 = vadd.f32 %v1505_v7, %v3893_v56  ;;  %v3964_v24 = vadd.f32 %v1509_v19, %v3899_v63 }
 0x3ee   : > { %v3967_v25 = vadd.f32 %v1513_v21, %v3901_v2 }
 0x3ef   : > { %v1522_v17 = vmax.f32 %v3946_v8, 0.0  ;;  %v1523_v18 = vmax.f32 %v3949_v13, 0.0 }
 0x3f0   : > { %v1525_v20 = vmax.f32 %v3967_v25, 0.0 }
 0x3f5   : > { %v3005_v32 = vpop.eup %3004 }
 0x3f6   : > { %v1541_v33 = vsel %vm1534_vm2, %v3005_v32, 0.0 }
 0x3f7   : > { %1542 = vadd.xlane.f32.xlu0 %v1541_v33 }
 0x45e   : > { %v1965_v35 = vpop.xlane.xlu0 %1964 }
 0x45f   : > { %v1966_v36 = vsub.f32 %v1962_v23, %v1965_v35 }
 0x461   : > { %v1967_v51 = vmul.f32 1.442695, %v1966_v36 }
 0x463   : > { %3006 = vpow2.f32 %v1967_v51 }
 0x464   : > { %v1114_v37 = vpop.xlane.xlu1 %1113 }
 0x465   : > { %3008 = vrcp.f32 %v1114_v37 }
 0x46d   : > { %v3918_v38 = vpop.eup %3006 }
 0x46e   : > { %v1969_v39 = vsel %vm1534_vm2, %v3918_v38, 0.0 }
 0x46f   : > { %v3009_v40 = vpop.eup %3008  ;;  %1970 = vadd.xlane.f32.xlu1 %v1969_v39 }
 0x470   : > { %v1116_v47 = vmul.f32 %v3009_v40, %v3003_v28  ;;  %v1524_v28 = vmax.f32 %v3964_v24, 0.0  ;;  %v1925_v40 = vld [vmem:[%s4265_s11] sm:$0xf] }
 0x472   : > { %1976 = vperm.xlu0 %2800, %v1116_v47  }
 0x476   : > { %2809 = vset.pattern.permute.xlu0 %v3402_v48 }
 0x477   : > { %2027 = vperm.xlu0 %2809, %v1116_v47  }
 0x47b   : > { %2810 = vset.pattern.permute.xlu0 %v3403_v49 }
 0x47c   : > { %2032 = vperm.xlu0 %2810, %v1116_v47  }
 0x480   : > { %1981 = vperm.xlu1 %2801, %v1116_v47   ;;  %2814 = vset.pattern.permute.xlu0 %v3404_v50 }
 0x484   : > { %2802 = vset.pattern.permute.xlu1 %v3404_v50  ;;  %v1543_v52 = vpop.xlane.xlu0 %1542 }
 0x485   : > { %3010 = vrcp.f32 %v1543_v52  ;;  %1986 = vperm.xlu1 %2802, %v1116_v47  }
 0x489   : > { %2803 = vset.pattern.permute.xlu1 %v3405_v53 }
 0x48a   : > { %1991 = vperm.xlu1 %2803, %v1116_v47  }
 0x48e   : > { %2804 = vset.pattern.permute.xlu1 %v3406_v54 }
 0x48f   : > { %v3011_v55 = vpop.eup %3010  ;;  %1999 = vperm.xlu1 %2804, %v1116_v47  }
 0x490   : > { %v1545_v57 = vmul.f32 %v3011_v55, %v3005_v32 }
 0x492   : > { %2059 = vperm.xlu0 %2814, %v1545_v57  }
 0x493   : > { %2805 = vset.pattern.permute.xlu1 %v3407_v58 }
 0x494   : > { %2004 = vperm.xlu1 %2805, %v1116_v47  }
 0x496   : > { %2817 = vset.pattern.permute.xlu0 %v3407_v58 }
 0x497   : > { %2077 = vperm.xlu0 %2817, %v1545_v57  }
 0x498   : > { %2806 = vset.pattern.permute.xlu1 %v3408_v59 }
 0x499   : > { %2009 = vperm.xlu1 %2806, %v1116_v47  }
 0x49b   : > { %2821 = vset.pattern.permute.xlu0 %v3401_v34 }
 0x49d   : > { %2807 = vset.pattern.permute.xlu1 %v3409_v60 }
 0x49e   : > { %2014 = vperm.xlu1 %2807, %v1116_v47  }
 0x4a2   : > { %2808 = vset.pattern.permute.xlu1 %v3410_v61 }
 0x4a3   : > { %2022 = vperm.xlu1 %2808, %v1116_v47  }
 0x4a7   : > { %2811 = vset.pattern.permute.xlu1 %v3411_v62 }
 0x4a8   : > { %2037 = vperm.xlu1 %2811, %v1116_v47  }
 0x4ac   : > { %2812 = vset.pattern.permute.xlu1 %v3398_v41 }
 0x4ad   : > { %2049 = vperm.xlu1 %2812, %v1545_v57  }
 0x4b1   : > { %2813 = vset.pattern.permute.xlu1 %v3401_v34  ;;  %v1067_v34 = vld [vmem:[%s4183_s6] sm:$0xf] }
 0x4b2   : > { %2054 = vperm.xlu1 %2813, %v1545_v57   ;;  %v1084_v36 = vrot.slane %v1067_v34, %v3953_v15  ;;  %v1080_v51 = vrot.slane %v1067_v34, %v3951_v14  ;;  %v1076_v37 = vrot.slane %v1067_v34, %v3941_v5  ;;  %v1072_v39 = vrot.slane %v1067_v34, %v3939_v4 }
 0x4b4   : > { %v1092_v47 = vadd.f32 %v1084_v36, %v3886_v46  ;;  %v1091_v48 = vadd.f32 %v1080_v51, %v3882_v43  ;;  %v1090_v49 = vadd.f32 %v1076_v37, %v3884_v44  ;;  %v1089_v52 = vadd.f32 %v1072_v39, %v3880_v42 }
 0x4b6   : > { %2815 = vset.pattern.permute.xlu1 %v3405_v53  ;;  %v4000_v55 = vmax.f32 %v1092_v47, 0.0  ;;  %v4004_v43 = vmax.f32 %v1091_v48, 0.0  ;;  %v4006_v44 = vmax.f32 %v1090_v49, 0.0  ;;  %v4012_v61 = vmax.f32 %v1089_v52, 0.0 }
 0x4b7   : > { %2064 = vperm.xlu1 %2815, %v1545_v57  }
 0x4bb   : > { %2816 = vset.pattern.permute.xlu1 %v3406_v54 }
 0x4bc   : > { %2072 = vperm.xlu1 %2816, %v1545_v57  }
 0x4c0   : > { %2818 = vset.pattern.permute.xlu1 %v3408_v59 }
 0x4c1   : > { %2082 = vperm.xlu1 %2818, %v1545_v57  }
 0x4c5   : > { %2819 = vset.pattern.permute.xlu1 %v3409_v60 }
 0x4c6   : > { %2087 = vperm.xlu1 %2819, %v1545_v57   ;;  %v1934_v57 = vrot.slane %v1925_v40, %v3941_v5 }
 0x4c8   : > { %v4018_v62 = vadd.f32 %v1934_v57, %v3908_v11 }
 0x4ca   : > { %2820 = vset.pattern.permute.xlu1 %v3398_v41  ;;  %v1952_v11 = vmax.f32 %v4018_v62, 0.0 }
 0x4f1   : > { %v1977_v16 = vpop.permute.xlu0 %1976 }
 0x4f2   : > { %v1979_v56 = vmul.f32 %v1977_v16, %v1522_v17 }
 0x4f6   : > { %v2028_v46 = vpop.permute.xlu0 %2027 }
 0x4f7   : > { %v2030_v16 = vmul.f32 %v2028_v46, %v1952_v11 }
 0x4fb   : > { %v2033_v7 = vpop.permute.xlu0 %2032 }
 0x4fc   : > { %v1971_v41 = vpop.xlane.xlu1 %1970 }
 0x4fd   : > { %3012 = vrcp.f32 %v1971_v41 }
 0x500   : > { %v1982_v45 = vpop.permute.xlu1 %1981 }
 0x501   : > { %v1984_v22 = vmul.f32 %v1982_v45, %v1523_v18 }
 0x503   : > { %v1995_v23 = vadd.f32 %v1984_v22, %v1979_v56 }
 0x504   : > { %v1987_v26 = vpop.permute.xlu1 %1986 }
 0x505   : > { %v1989_v31 = vmul.f32 %v1987_v26, %v1524_v28 }
 0x507   : > { %v3013_v27 = vpop.eup %3012 }
 0x508   : > { %v1973_v29 = vmul.f32 %v3013_v27, %v3918_v38 }
 0x509   : > { %v1992_v30 = vpop.permute.xlu1 %1991 }
 0x50a   : > { %v1994_v32 = vmul.f32 %v1992_v30, %v1525_v20  ;;  %2103 = vperm.xlu0 %2821, %v1973_v29   ;;  %2098 = vperm.xlu1 %2820, %v1973_v29  }
 0x50c   : > { %v1996_v63 = vadd.f32 %v1994_v32, %v1989_v31 }
 0x50e   : > { %v3976_v2 = vadd.f32 %v1996_v63, %v1995_v23  ;;  %v2000_v33 = vpop.permute.xlu1 %1999  ;;  %2824 = vset.pattern.permute.xlu0 %v3406_v54  ;;  %2822 = vset.pattern.permute.xlu1 %v3404_v50  ;;  %v1930_v50 = vrot.slane %v1925_v40, %v3939_v4 }
 0x50f   : > { %2121 = vperm.xlu0 %2824, %v1973_v29   ;;  %2108 = vperm.xlu1 %2822, %v1973_v29   ;;  %v2002_v5 = vmul.f32 %v2000_v33, %v4012_v61 }
 0x513   : > { %v2005_v35 = vpop.permute.xlu1 %2004  ;;  %2827 = vset.pattern.permute.xlu0 %v3409_v60  ;;  %2823 = vset.pattern.permute.xlu1 %v3405_v53  ;;  %v1938_v53 = vrot.slane %v1925_v40, %v3951_v14  ;;  %v4009_v60 = vadd.f32 %v1930_v50, %v3904_v9 }
 0x514   : > { %2136 = vperm.xlu0 %2827, %v1973_v29   ;;  %2113 = vperm.xlu1 %2823, %v1973_v29   ;;  %v2007_v1 = vmul.f32 %v2005_v35, %v4006_v44 }
 0x515   : > { %v1951_v9 = vmax.f32 %v4009_v60, 0.0 }
 0x516   : > { %v2018_v41 = vadd.f32 %v2007_v1, %v2002_v5 }
 0x518   : > { %v2010_v38 = vpop.permute.xlu1 %2009  ;;  %2825 = vset.pattern.permute.xlu1 %v3407_v58  ;;  %v1942_v58 = vrot.slane %v1925_v40, %v3953_v15 }
 0x519   : > { %2126 = vperm.xlu1 %2825, %v1973_v29   ;;  %v2012_v3 = vmul.f32 %v2010_v38, %v4004_v43 }
 0x51a   : > { %v4021_v0 = vadd.f32 %v1942_v58, %v3910_v12 }
 0x51c   : > { %v1954_v12 = vmax.f32 %v4021_v0, 0.0 }
 0x51d   : > { %v2015_v54 = vpop.permute.xlu1 %2014  ;;  %2826 = vset.pattern.permute.xlu1 %v3408_v59  ;;  %v4015_v59 = vadd.f32 %v1938_v53, %v3906_v10 }
 0x51e   : > { %2131 = vperm.xlu1 %2826, %v1973_v29   ;;  %v2017_v42 = vmul.f32 %v2015_v54, %v4000_v55 }
 0x51f   : > { %v1953_v10 = vmax.f32 %v4015_v59, 0.0 }
 0x520   : > { %v2019_v6 = vadd.f32 %v2017_v42, %v2012_v3 }
 0x521   : > { %v2035_v19 = vmul.f32 %v2033_v7, %v1953_v10 }
 0x522   : > { %v2023_v4 = vpop.permute.xlu1 %2022  ;;  %v2020_v21 = vadd.f32 %v2019_v6, %v2018_v41 }
 0x523   : > { %v2025_v14 = vmul.f32 %v2023_v4, %v1951_v9 }
 0x524   : > { %v2044_v23 = vadd.f32 %v2020_v21, %v3976_v2 }
 0x525   : > { %v2041_v56 = vadd.f32 %v2030_v16, %v2025_v14 }
 0x527   : > { %v2038_v15 = vpop.permute.xlu1 %2037 }
 0x528   : > { %v2040_v45 = vmul.f32 %v2038_v15, %v1954_v12 }
 0x52a   : > { %v2042_v22 = vadd.f32 %v2040_v45, %v2035_v19 }
 0x52c   : > { %v2043_v26 = vadd.f32 %v2042_v22, %v2041_v56  ;;  %v2050_v27 = vpop.permute.xlu1 %2049 }
 0x52e   : > { %v2045_v29 = vadd.f32 %v2044_v23, %v2043_v26 }
 0x530   : > { %2046 = vst [vmem:[%s599_s15] sm:$0xff] %v2045_v29 }
 0x531   : > { %v2055_v30 = vpop.permute.xlu1 %2054 }
 0x532   : > { %3257 = shalt.err (!%p3254_p2)
}
 0x533   : > { %s3258_s3 = scalar_lea.hbm %s4047_s20, 128  ;;  %s3262_s21 = scalar_lea.hbm %s4267_s17, 256 }
 0x534   : > { %p3259_p4 = scmp.ne.s32.totalorder %s4047_s20, %s3258_s3  ;;  %p3263_p10 = scmp.lt.u32.totalorder %s4047_s20, %s4267_s17 }
 0x535   : > { %p3264_p12 = scmp.lt.u32.totalorder %s3262_s21, %s3258_s3  ;;  %p3266_p7 = scmp.lt.u32.totalorder %s3258_s3, %s4047_s20 }
 0x536   : > { %p3260_p9 = pnand %p3259_p4, %p4268_p8 }
 0x537   : > { %p3265_p6 = por %p3264_p12, %p3263_p10 }
 0x538   : > { %p3261_p1 = pneg %p3260_p9 }
 0x539   : > { %p3267_p11 = por %p3266_p7, %p3265_p6 }
 0x53b   : > { %p3268_p5 = pnand %p3267_p11, %p3261_p1 }
 0x53d   : > { %3271 = shalt.err (!%p3268_p5)
}
 0x53e   : > { %2693 = dma.vmem_to_hbm [thread:$0]  (%p4268_p8), %s4049_s13, 128, %s4047_s20, %s2146_s22   ;;  %v2052_v31 = vmul.f32 %v2050_v27, %v1522_v17  ;;  %v2057_v32 = vmul.f32 %v2055_v30, %v1523_v18  ;;  %v2060_v63 = vpop.permute.xlu0 %2059  ;;  %v2065_v33 = vpop.permute.xlu1 %2064 }
 0x53f   : > { %v2062_v34 = vmul.f32 %v2060_v63, %v1524_v28  ;;  %v2067_v35 = vmul.f32 %v2065_v33, %v1525_v20  ;;  %s606_s13 = scalar_lea.vmem [#allocation17], %s3787_s16  ;;  %s4269_s22 = sld [smem:[#allocation39_spill]] }
 0x540   : > { %v2068_v2 = vadd.f32 %v2057_v32, %v2052_v31  ;;  %s2182_s1 = sshll.u32 %s606_s13, 4  ;;  %s4096_s8 = scalar_lea.sflag [#allocation18], %s518_s25  ;;  %s4092_s1 = int_to_ptr.vmem [resolvable:$true] %s2182_s1 }
 0x541   : > { %v2069_v36 = vadd.f32 %v2067_v35, %v2062_v34  ;;  %s3272_s19 = scalar_lea.vmem %s4092_s1, 128  ;;  %s3413_s24 = smov [#allocation17]  }
 0x542   : > { %v2073_v37 = vpop.permute.xlu1 %2072  ;;  %v2078_v8 = vpop.permute.xlu0 %2077  ;;  %p3273_p0 = scmp.ne.s32.totalorder %s4092_s1, %s3272_s19  ;;  %s3276_s3 = sshll.u32 %s3413_s24, 4  ;;  %s3277_s3 = int_to_ptr.vmem [resolvable:$false] %s3276_s3 }
 0x543   : > { %v2070_v51 = vadd.f32 %v2069_v36, %v2068_v2  ;;  %v2075_v13 = vmul.f32 %v2073_v37, %v4012_v61  ;;  %v2080_v18 = vmul.f32 %v2078_v8, %v4006_v44  ;;  %s3278_s29 = scalar_lea.vmem %s3277_s3, 256  ;;  %p3279_p2 = scmp.lt.s32.totalorder %s4092_s1, %s3277_s3 }
 0x544   : > { %p3274_p13 = pnand %p3273_p0, %p4268_p8  ;;  %p3280_p4 = scmp.lt.s32.totalorder %s3278_s29, %s3272_s19 }
 0x545   : > { %v2091_v28 = vadd.f32 %v2080_v18, %v2075_v13  ;;  %s4090_s5 = scalar_lea.hbm %s4269_s22, %s4039_s18 }
 0x546   : > { %v2083_v38 = vpop.permute.xlu1 %2082  ;;  %p3275_p3 = pneg %p3274_p13  ;;  %p3281_p9 = por %p3280_p4, %p3279_p2 }
 0x547   : > { %v2085_v39 = vmul.f32 %v2083_v38, %v4004_v43 }
 0x548   : > { %p3282_p1 = pnand %p3281_p9, %p3275_p3 }
 0x54a   : > { %v2088_v17 = vpop.permute.xlu1 %2087 }
 0x54b   : > { %v2090_v24 = vmul.f32 %v2088_v17, %v4000_v55 }
 0x54d   : > { %v2092_v25 = vadd.f32 %v2090_v24, %v2085_v39 }
 0x54f   : > { %v2093_v20 = vadd.f32 %v2092_v25, %v2091_v28 }
 0x551   : > { %v2094_v40 = vadd.f32 %v2093_v20, %v2070_v51 }
 0x553   : > { %2095 = vst [vmem:[%s606_s13] sm:$0xff] %v2094_v40 }
 0x554   : > { %3285 = shalt.err (!%p3282_p1)
}
 0x555   : > { %s3286_s14 = scalar_lea.hbm %s4090_s5, 128  ;;  %s3290_s21 = scalar_lea.hbm %s4269_s22, 256 }
 0x556   : > { %p3287_p10 = scmp.ne.s32.totalorder %s4090_s5, %s3286_s14  ;;  %p3291_p7 = scmp.lt.u32.totalorder %s4090_s5, %s4269_s22 }
 0x557   : > { %p3292_p11 = scmp.lt.u32.totalorder %s3290_s21, %s3286_s14  ;;  %p3294_p0 = scmp.lt.u32.totalorder %s3286_s14, %s4090_s5 }
 0x558   : > { %p3288_p12 = pnand %p3287_p10, %p4268_p8 }
 0x559   : > { %p3293_p5 = por %p3292_p11, %p3291_p7 }
 0x55a   : > { %p3289_p6 = pneg %p3288_p12 }
 0x55b   : > { %p3295_p13 = por %p3294_p0, %p3293_p5 }
 0x55d   : > { %p3296_p3 = pnand %p3295_p13, %p3289_p6 }
 0x55f   : > { %3299 = shalt.err (!%p3296_p3)
}
 0x560   : > { %2694 = dma.vmem_to_hbm [thread:$0]  (%p4268_p8), %s4092_s1, 128, %s4090_s5, %s4096_s8  }
 0x561   : > { %s613_s13 = scalar_lea.vmem [#allocation19], %s3787_s16  ;;  %s4270_s5 = sld [smem:[#allocation40_spill]] }
 0x562   : > { %s2195_s1 = sshll.u32 %s613_s13, 4  ;;  %s3414_s3 = smov [#allocation19]   ;;  %s2196_s1 = int_to_ptr.vmem [resolvable:$true] %s2195_s1 }
 0x563   : > { %s3300_s24 = scalar_lea.vmem %s2196_s1, 128  ;;  %s3304_s29 = sshll.u32 %s3414_s3, 4  ;;  %s3305_s29 = int_to_ptr.vmem [resolvable:$false] %s3304_s29 }
 0x564   : > { %p3301_p2 = scmp.ne.s32.totalorder %s2196_s1, %s3300_s24  ;;  %s3306_s16 = scalar_lea.vmem %s3305_s29, 256 }
 0x565   : > { %p3307_p1 = scmp.lt.s32.totalorder %s2196_s1, %s3305_s29  ;;  %p3308_p10 = scmp.lt.s32.totalorder %s3306_s16, %s3300_s24 }
 0x566   : > { %p3302_p4 = pnand %p3301_p2, %p4268_p8 }
 0x567   : > { %s4137_s19 = scalar_lea.hbm %s4270_s5, %s4039_s18  ;;  %p3309_p12 = por %p3308_p10, %p3307_p1 }
 0x568   : > { %p3303_p9 = pneg %p3302_p4 }
 0x56a   : > { %p3310_p6 = pnand %p3309_p12, %p3303_p9 }
 0x589   : > { %v2099_v47 = vpop.permute.xlu1 %2098  ;;  %v2104_v49 = vpop.permute.xlu0 %2103 }
 0x58a   : > { %v2101_v58 = vmul.f32 %v2099_v47, %v1951_v9  ;;  %v2106_v46 = vmul.f32 %v2104_v49, %v1952_v11 }
 0x58c   : > { %v2117_v60 = vadd.f32 %v2106_v46, %v2101_v58 }
 0x58e   : > { %v2109_v48 = vpop.permute.xlu1 %2108  ;;  %v2122_v52 = vpop.permute.xlu0 %2121 }
 0x58f   : > { %v2111_v42 = vmul.f32 %v2109_v48, %v1953_v10  ;;  %v2124_v4 = vmul.f32 %v2122_v52, %v4012_v61 }
 0x593   : > { %v2114_v50 = vpop.permute.xlu1 %2113  ;;  %v2137_v57 = vpop.permute.xlu0 %2136 }
 0x594   : > { %v2116_v54 = vmul.f32 %v2114_v50, %v1954_v12  ;;  %v2139_v0 = vmul.f32 %v2137_v57, %v4000_v55 }
 0x596   : > { %v2118_v5 = vadd.f32 %v2116_v54, %v2111_v42 }
 0x598   : > { %v2127_v53 = vpop.permute.xlu1 %2126  ;;  %v2119_v62 = vadd.f32 %v2118_v5, %v2117_v60 }
 0x599   : > { %v2129_v1 = vmul.f32 %v2127_v53, %v4006_v44 }
 0x59b   : > { %v2140_v9 = vadd.f32 %v2129_v1, %v2124_v4 }
 0x59d   : > { %v2132_v3 = vpop.permute.xlu1 %2131 }
 0x59e   : > { %v2134_v6 = vmul.f32 %v2132_v3, %v4004_v43 }
 0x5a0   : > { %v2141_v7 = vadd.f32 %v2139_v0, %v2134_v6 }
 0x5a2   : > { %v2142_v59 = vadd.f32 %v2141_v7, %v2140_v9 }
 0x5a4   : > { %v2143_v11 = vadd.f32 %v2142_v59, %v2119_v62 }
 0x5a6   : > { %2144 = vst [vmem:[%s613_s13] sm:$0xff] %v2143_v11 }
 0x5a7   : > { %3313 = shalt.err (!%p3310_p6)
}
 0x5a8   : > { %s3314_s18 = scalar_lea.hbm %s4137_s19, 128  ;;  %s3318_s12 = scalar_lea.hbm %s4270_s5, 256 }
 0x5a9   : > { %p3315_p7 = scmp.ne.s32.totalorder %s4137_s19, %s3314_s18  ;;  %p3319_p0 = scmp.lt.u32.totalorder %s4137_s19, %s4270_s5 }
 0x5aa   : > { %p3320_p13 = scmp.lt.u32.totalorder %s3318_s12, %s3314_s18  ;;  %p3322_p2 = scmp.lt.u32.totalorder %s3314_s18, %s4137_s19 }
 0x5ab   : > { %p3316_p11 = pnand %p3315_p7, %p4268_p8 }
 0x5ac   : > { %p3321_p3 = por %p3320_p13, %p3319_p0 }
 0x5ad   : > { %p3317_p5 = pneg %p3316_p11 }
 0x5ae   : > { %p3323_p4 = por %p3322_p2, %p3321_p3 }
 0x5b0   : > { %p3324_p9 = pnand %p3323_p4, %p3317_p5 }
 0x5b2   : > { %3327 = shalt.err (!%p3324_p9)
}
 0x5b3   : > { %2695 = dma.vmem_to_hbm [thread:$0]  (%p4268_p8), %s2196_s1, 128, %s4137_s19, %s4096_s8  }
 0x5b4 PF: > { %s4271_s15 = sld [smem:[#allocation27_spill]]  ;;  %s4272_s13 = sld [smem:[#allocation32_spill]] }
 0x5b5   : > { %s4273_s30 = sld [smem:[#allocation28_spill]] }
 0x5ba   : > { %s2207_s20 = sand.u32 1, %s4271_s15   ;;  %p4274_p1 = scmp.ne.s32.totalorder %s4272_s13, 0 }
 0x5bb   : > { %p4275_p10 = scmp.ge.s32.totalorder %s4273_s30, 2  ;;  %s2208_s24 = scalar_lea.sflag [#allocation4], %s2207_s20 }
 0x5bd   : > { %p2726_p12 = pnand %p4275_p10, %p4274_p1 }
 0x5bf   : > { %3365 = dma.done.wait (!%p2726_p12), %s2208_s24, 128  }
 0x5c0   : > { %3367 = vsyncadd (!%p2726_p12), %s2208_s24, 4294967168  ;;  %s4276_s3 = sadd.s32 4294967294, %s4273_s30  }
 0x5c1   : > { %s2216_s29 = sand.u32 1, %s4276_s3  }
 0x5c2   : > { %s2217_s16 = scalar_lea.sflag [#allocation18], %s2216_s29 }
 0x5c3   : > { %3369 = dma.done.wait (!%p2726_p12), %s2217_s16, 256  }
 0x5c4   : > { %3371 = vsyncadd (!%p2726_p12), %s2217_s16, 4294967040  ;;  %s4277_s28 = sld [smem:[#allocation29_spill]]  ;;  %s4278_s8 = sld [smem:[#allocation30_spill]] }
 0x5c5   : > { %s4279_s25 = smov %s3378_s26  ;;  %s4280_s26 = smov %s3382_s27 }
 0x5ca   : > { %p36_p8 = scmp.ge.s32.totalorder %s4277_s28, 4   ;;  %s4281_s27 = smov %s4278_s8 }
 0x5cc   :  { %38 = sbr.rel (!%p36_p8) target bundleno = 21 (0x15), region = 185 }
 0x5d3   :  { %2231 = vsyncpa [#allocation3], 1 }
 0x5d4   :  { %2233 = vsyncpa [#allocation3 + $0x1], 1 }
 0x5d5   :  { %2234 = vsyncpa [#allocation6], 1 }
 0x5d6   :  { %2236 = vsyncpa [#allocation6 + $0x1], 1 }
 0x5d7   :  { %2237 = vsyncpa [#allocation9], 1 }
 0x5d8   :  { %2238 = vsyncpa [#allocation12], 1 }
 0x5d9   :  { %2239 = vsyncpa [#allocation15], 1 }
 0x5da   :  { %2240 = vsyncpa [#allocation4], 1 }
 0x5db   :  { %2242 = vsyncpa [#allocation4 + $0x1], 1 }
 0x5dc   :  { %2243 = vsyncpa [#allocation18], 1 }
 0x5dd   :  { %2245 = vsyncpa [#allocation18 + $0x1], 1 }

</bundles_post_ra>
